<compile_context>
chip_gen: v7x
topology: tpu7x:2x2x1
jax: 0.10.0
libtpu: 0.0.40
codegen_flags: <defaults>
</compile_context>

<pallas_src>
import functools

import jax
import jax.numpy as jnp
from jax.experimental import pallas as pl
from jax.experimental.pallas import tpu as pltpu


_INV_SQRT2 = 0.7071067811865476       # Python floats -> jaxpr literals
_SQRT_2_OVER_PI = 0.7978845608028654


def _mlm_head_kernel(x_ref, wd_ref, bd_ref, g_ref, beta_ref, e_ref, db_ref,
                     o_ref, t_ref, *, eps, dense_precision, dec_precision,
                     approx_gelu):
    # x_ref:    (tm, H)   row tile of flattened hidden_states
    # wd_ref:   (H, H)    dense weight, (out, in) as stored by nn.Linear
    # bd_ref:   (1, H)    dense bias
    # g_ref:    (1, H)    LayerNorm gamma
    # beta_ref: (1, H)    LayerNorm beta
    # e_ref:    (tn, H)   embedding-weight tile (tied decoder weight)
    # db_ref:   (1, tn)   decoder output-bias tile
    # o_ref:    (tm, tn)  prediction-score tile
    # t_ref:    (tm, H)   transform scratch, held in the decoder-matmul dtype
    j = pl.program_id(1)  # vocab-tile index (innermost grid axis)

    # ---- transform: dense -> gelu -> LayerNorm, computed once per row tile ----
    @pl.when(j == 0)
    def _():
        # Contract the "in" axis of both operands (Wd stays (out, in); no
        # transpose materialized, operands stay in native dtype for the MXU).
        h = jax.lax.dot_general(
            x_ref[...], wd_ref[...],
            dimension_numbers=(((1,), (1,)), ((), ())),
            preferred_element_type=jnp.float32,
            precision=dense_precision,
        )
        h = h + bd_ref[...].astype(jnp.float32)
        if approx_gelu:
            # tanh-approx gelu: exp/tanh ride the otherwise-idle EUP slot.
            h = 0.5 * h * (1.0 + jnp.tanh(_SQRT_2_OVER_PI
                                          * (h + 0.044715 * h * h * h)))
        else:
            # Exact (erf) gelu -- matches HF BERT's default ACT2FN["gelu"].
            h = h * 0.5 * (1.0 + jax.lax.erf(h * _INV_SQRT2))
        # LayerNorm over the hidden (lane) dim.
        mean = jnp.mean(h, axis=-1, keepdims=True)
        c = h - mean
        var = jnp.mean(c * c, axis=-1, keepdims=True)
        inv = jax.lax.rsqrt(var + eps)
        t = (c * inv * g_ref[...].astype(jnp.float32)
             + beta_ref[...].astype(jnp.float32))
        # Cast ONCE into the decoder-matmul dtype; reused for every vocab tile.
        t_ref[...] = t.astype(t_ref.dtype)

    # ---- decoder: scores = t @ E^T + bias for this vocab tile ----
    scores = jax.lax.dot_general(
        t_ref[...], e_ref[...],
        dimension_numbers=(((1,), (1,)), ((), ())),
        preferred_element_type=jnp.float32,
        precision=dec_precision,
    )
    scores = scores + db_ref[...].astype(jnp.float32)
    o_ref[...] = scores.astype(o_ref.dtype)


def _tpu_vmem_capacity_bytes():
    """Physical VMEM per TensorCore; conservative fallback if query fails."""
    try:
        return int(pltpu.get_tpu_info().vmem_capacity_bytes)
    except Exception:
        return 64 * 1024 * 1024  # v7x per-TC floor -> safe on every generation


def _pick_tile(total, target, multiple):
    """Largest divisor of `total` that is <= target, preferring multiples of
    `multiple` (sublane/lane alignment)."""
    target = max(1, min(int(target), int(total)))
    best = None
    for t in range(target, 0, -1):
        if total % t:
            continue
        if t % multiple == 0:
            return t
        if best is None:
            best = t
    return best if best is not None else int(total)


def _vmem_estimate(tm, tn, H, x_isz, w_isz, e_isz, o_isz, t_isz):
    return (2 * tm * H * x_isz          # x tile (double-buffered)
            + 2 * H * H * w_isz         # dense weight (worst case: 2 buffers)
            + 2 * tn * H * e_isz        # embedding tile (streamed)
            + 2 * tm * tn * o_isz       # output tile
            + tm * H * t_isz            # transform scratch
            + 8 * H * w_isz + 2 * tn * o_isz
            + (1 << 20))                # slack for compiler-internal scratch


def bert_only_mlm_head(x, dense_w, dense_b, ln_gamma, ln_beta, emb_w, dec_bias,
                       *, eps=1e-12, tm=None, tn=None, out_dtype=None,
                       precision=None, approx_gelu=False):
    """BertOnlyMLMHead forward.

    x:        (batch, seq, H)
    dense_w:  (H, H)   nn.Linear weight (out, in)
    dense_b:  (H,)
    ln_gamma: (H,)
    ln_beta:  (H,)
    emb_w:    (V, H)   tied embedding weights (decoder weight)
    dec_bias: (V,)     decoder output bias
    returns   (batch, seq, V) prediction scores

    out_dtype=jnp.bfloat16 halves the dominant rows x V HBM write if downstream
    softmax/loss tolerates it.  precision=jax.lax.Precision.DEFAULT (or HIGH)
    avoids the multi-pass HIGHEST f32 matmul path (recommended on v5e).
    """
    B, S, H = x.shape
    V, H2 = emb_w.shape
    assert H2 == H, "embedding width must match hidden size"
    rows = B * S

    out_dtype = out_dtype or x.dtype
    x_isz = jnp.dtype(x.dtype).itemsize
    w_isz = jnp.dtype(dense_w.dtype).itemsize
    e_isz = jnp.dtype(emb_w.dtype).itemsize
    o_isz = jnp.dtype(out_dtype).itemsize
    scratch_dtype = emb_w.dtype          # decoder-matmul dtype
    t_isz = jnp.dtype(scratch_dtype).itemsize

    # ---- generation-aware VMEM budget & tile selection ----------------------
    vmem_cap = _tpu_vmem_capacity_bytes()
    vmem_budget = min(100 << 20, int(0.80 * vmem_cap))   # ~100 MiB v5e/v6e, ~51 MiB v7x

    if tm is None or tn is None:
        if vmem_budget >= (96 << 20):       # 128 MiB chips (v5e / v6e)
            tm_target, tn_target = 1024, 2048
        else:                               # 64 MiB/TC (v7x) or unknown
            tm_target, tn_target = 1024, 1024
        # Keep rows/tm >= 2 so the "parallel" row axis can split across the two
        # TensorCores on v7x (harmless on single-TC chips).
        tm_target = min(tm_target, max(rows // 2, 8))
        tm_sel = _pick_tile(rows, tm_target, 8) if tm is None else tm
        tn_sel = _pick_tile(V, tn_target, 128) if tn is None else tn
        # Shrink until the working set fits the scoped-VMEM budget.
        while _vmem_estimate(tm_sel, tn_sel, H, x_isz, w_isz, e_isz, o_isz,
                             t_isz) > vmem_budget:
            if tn_sel >= tm_sel and tn_sel > 128:
                tn_sel = _pick_tile(V, tn_sel // 2, 128)
            elif tm_sel > 8:
                tm_sel = _pick_tile(rows, tm_sel // 2, 8)
            else:
                break
        tm, tn = tm_sel, tn_sel

    tm = min(int(tm), rows)
    tn = min(int(tn), V)
    assert rows % tm == 0, "rows must be divisible by row tile tm"
    assert V % tn == 0, ("vocab size must be divisible by vocab tile tn "
                         "(pad emb_w / dec_bias for real BERT vocab sizes)")

    est = _vmem_estimate(tm, tn, H, x_isz, w_isz, e_isz, o_isz, t_isz)
    vmem_limit = int(min(max(vmem_budget, est + (4 << 20)), vmem_cap))

    # Exact f32 matmuls when operands are f32 (matches PyTorch semantics);
    # bf16 operands take the native bf16 MXU path.  Override via `precision`
    # (e.g. DEFAULT/HIGH) to skip the multi-pass HIGHEST path on v5e.
    if precision is None:
        dense_precision = (jax.lax.Precision.HIGHEST
                           if (x.dtype == jnp.float32
                               and dense_w.dtype == jnp.float32)
                           else jax.lax.Precision.DEFAULT)
        dec_precision = (jax.lax.Precision.HIGHEST
                         if emb_w.dtype == jnp.float32
                         else jax.lax.Precision.DEFAULT)
    else:
        dense_precision = dec_precision = precision

    kernel = functools.partial(_mlm_head_kernel, eps=float(eps),
                               dense_precision=dense_precision,
                               dec_precision=dec_precision,
                               approx_gelu=bool(approx_gelu))

    x2 = x.reshape(rows, H)
    bd2 = dense_b.reshape(1, H)
    g2 = ln_gamma.reshape(1, H)
    be2 = ln_beta.reshape(1, H)
    db2 = dec_bias.reshape(1, V)

    n_row_tiles = rows // tm
    cost = pl.CostEstimate(
        flops=2 * rows * H * H + 2 * rows * H * V,
        transcendentals=rows * H,
        bytes_accessed=(rows * H * x_isz                 # activations (read once)
                        + H * H * w_isz + 4 * H * w_isz  # dense W + small params
                        + n_row_tiles * V * H * e_isz    # emb re-streamed per row tile
                        + V * o_isz                      # decoder bias
                        + rows * V * o_isz),             # score write
    )

    def run(buffered_consts):
        # Grid-constant operands never change: a single VMEM buffer suffices,
        # reclaiming the second dense-weight buffer for larger tiles.
        cb = {"pipeline_mode": pl.Buffered(1)} if buffered_consts else {}
        grid_spec = pltpu.PrefetchScalarGridSpec(
            num_scalar_prefetch=0,
            grid=(rows // tm, V // tn),
            in_specs=[
                pl.BlockSpec((tm, H), lambda i, j: (i, 0)),        # x rows (const over j)
                pl.BlockSpec((H, H), lambda i, j: (0, 0), **cb),   # dense W (resident)
                pl.BlockSpec((1, H), lambda i, j: (0, 0), **cb),   # dense bias
                pl.BlockSpec((1, H), lambda i, j: (0, 0), **cb),   # LN gamma
                pl.BlockSpec((1, H), lambda i, j: (0, 0), **cb),   # LN beta
                pl.BlockSpec((tn, H), lambda i, j: (j, 0)),        # emb tile (streamed)
                pl.BlockSpec((1, tn), lambda i, j: (0, j)),        # decoder bias tile
            ],
            out_specs=pl.BlockSpec((tm, tn), lambda i, j: (i, j)),
            scratch_shapes=[pltpu.VMEM((tm, H), scratch_dtype)],   # transform output
        )
        return pl.pallas_call(
            kernel,
            out_shape=jax.ShapeDtypeStruct((rows, V), out_dtype),
            grid_spec=grid_spec,
            compiler_params=pltpu.CompilerParams(
                # Row axis shards across TensorCores; vocab axis must stay
                # sequential per row tile (scratch filled at j == 0).
                dimension_semantics=("parallel", "arbitrary"),
                vmem_limit_bytes=vmem_limit,
            ),
            cost_estimate=cost,
        )(x2, dense_w, bd2, g2, be2, emb_w, db2)

    try:
        out = run(True)
    except Exception:
        # pipeline_mode=pl.Buffered(1) not supported by this jax build/backend;
        # fall back to default double-buffering of the grid-constant operands.
        out = run(False)

    return out.reshape(B, S, V)


def _reference(x, wd, bd, gamma, beta, emb, db, eps=1e-12):
    hp = jax.lax.Precision.HIGHEST
    h = jnp.einsum("bsh,oh->bso", x, wd, precision=hp) + bd
    h = h * 0.5 * (1.0 + jax.lax.erf(h * _INV_SQRT2))
    mean = jnp.mean(h, axis=-1, keepdims=True)
    var = jnp.mean((h - mean) ** 2, axis=-1, keepdims=True)
    t = (h - mean) / jnp.sqrt(var + eps) * gamma + beta
    return jnp.einsum("bsh,vh->bsv", t, emb, precision=hp) + db


if __name__ == "__main__":
    B, S, H, V = 2, 8, 32, 256   # small demo shapes (hidden=32, vocab=256)
    key = jax.random.PRNGKey(0)
    kx, kw, kb, kg, kbe, ke, kdb = jax.random.split(key, 7)

    x = jax.random.normal(kx, (B, S, H), dtype=jnp.float32)
    dense_w = jax.random.normal(kw, (H, H), dtype=jnp.float32) * (1.0 / jnp.sqrt(H))
    dense_b = 0.02 * jax.random.normal(kb, (H,), dtype=jnp.float32)
    gamma = 1.0 + 0.01 * jax.random.normal(kg, (H,), dtype=jnp.float32)
    beta = 0.01 * jax.random.normal(kbe, (H,), dtype=jnp.float32)
    emb_w = jax.random.normal(ke, (V, H), dtype=jnp.float32) * (1.0 / jnp.sqrt(H))
    dec_bias = 0.02 * jax.random.normal(kdb, (V,), dtype=jnp.float32)

    # Auto tile / VMEM selection (clamped to the tiny demo shapes).
    y = bert_only_mlm_head(x, dense_w, dense_b, gamma, beta, emb_w, dec_bias)
    y = jax.block_until_ready(y)

    y_ref = _reference(x, dense_w, dense_b, gamma, beta, emb_w, dec_bias)
    assert y.shape == (B, S, V)
    assert jnp.allclose(y, y_ref, atol=1e-4, rtol=1e-4), "mismatch vs reference"

    print("KERNEL_OK")
</pallas_src>

<mosaic_0001>
module attributes {stable_mosaic.version = 11 : i64} {
  func.func @_mlm_head_kernel(%arg0: i32, %arg1: i32, %arg2: memref<8x32xf32, #tpu.memory_space<vmem>>, %arg3: memref<32x32xf32, #tpu.memory_space<vmem>>, %arg4: memref<1x32xf32, #tpu.memory_space<vmem>>, %arg5: memref<1x32xf32, #tpu.memory_space<vmem>>, %arg6: memref<1x32xf32, #tpu.memory_space<vmem>>, %arg7: memref<256x32xf32, #tpu.memory_space<vmem>>, %arg8: memref<1x256xf32, #tpu.memory_space<vmem>>, %arg9: memref<8x256xf32, #tpu.memory_space<vmem>>, %arg10: memref<8x32xf32, #tpu.memory_space<vmem>>) attributes {dimension_semantics = [#tpu.dimension_semantics<parallel>, #tpu.dimension_semantics<arbitrary>], iteration_bounds = array<i64: 2, 1>, scalar_prefetch = 0 : i64, scratch_operands = 1 : i64, tpu.core_type = #tpu.core_type<tc>, window_params = [{transform_indices = @transform_0, window_bounds = array<i64: 8, 32>}, {pipeline_mode = #tpu.pipeline_mode<synchronous>, transform_indices = @transform_1, window_bounds = array<i64: 32, 32>}, {pipeline_mode = #tpu.pipeline_mode<synchronous>, transform_indices = @transform_2, window_bounds = array<i64: 1, 32>}, {pipeline_mode = #tpu.pipeline_mode<synchronous>, transform_indices = @transform_3, window_bounds = array<i64: 1, 32>}, {pipeline_mode = #tpu.pipeline_mode<synchronous>, transform_indices = @transform_4, window_bounds = array<i64: 1, 32>}, {transform_indices = @transform_5, window_bounds = array<i64: 256, 32>}, {transform_indices = @transform_6, window_bounds = array<i64: 1, 256>}, {transform_indices = @transform_7, window_bounds = array<i64: 8, 256>}]} {
    %c0_i32 = arith.constant 0 : i32
    %0 = arith.cmpi eq, %arg1, %c0_i32 : i32
    %1 = arith.extui %0 : i1 to i32
    %c0_i32_0 = arith.constant 0 : i32
    %2 = arith.cmpi ne, %1, %c0_i32_0 : i32
    scf.if %2 {
      %c0_8 = arith.constant 0 : index
      %c0_9 = arith.constant 0 : index
      %10 = vector.load %arg2[%c0_8, %c0_9] : memref<8x32xf32, #tpu.memory_space<vmem>>, vector<8x32xf32>
      %c0_10 = arith.constant 0 : index
      %c0_11 = arith.constant 0 : index
      %11 = vector.load %arg3[%c0_10, %c0_11] : memref<32x32xf32, #tpu.memory_space<vmem>>, vector<32x32xf32>
      %cst_12 = arith.constant dense<0.000000e+00> : vector<8x32xf32>
      %12 = tpu.matmul %10, %11, %cst_12 {dimension_numbers = #tpu.dot_dimension_numbers<[1], [1], [0], [0], [0, 0, 1, 0], [], []>, precision = #tpu.contract_precision<fp32>} : vector<8x32xf32>, vector<32x32xf32>, vector<8x32xf32> -> vector<8x32xf32>
      %c0_13 = arith.constant 0 : index
      %c0_14 = arith.constant 0 : index
      %13 = vector.load %arg4[%c0_13, %c0_14] : memref<1x32xf32, #tpu.memory_space<vmem>>, vector<1x32xf32>
      %14 = vector.broadcast %13 : vector<1x32xf32> to vector<8x32xf32>
      %15 = arith.addf %12, %14 : vector<8x32xf32>
      %cst_15 = arith.constant 5.000000e-01 : f32
      %16 = vector.broadcast %cst_15 : f32 to vector<8x32xf32>
      %17 = arith.mulf %15, %16 : vector<8x32xf32>
      %cst_16 = arith.constant 0.707106769 : f32
      %18 = vector.broadcast %cst_16 : f32 to vector<8x32xf32>
      %19 = arith.mulf %15, %18 : vector<8x32xf32>
      %20 = math.erf %19 : vector<8x32xf32>
      %cst_17 = arith.constant 1.000000e+00 : f32
      %21 = vector.broadcast %cst_17 : f32 to vector<8x32xf32>
      %22 = arith.addf %21, %20 : vector<8x32xf32>
      %23 = arith.mulf %17, %22 : vector<8x32xf32>
      %cst_18 = arith.constant dense<0.000000e+00> : vector<8xf32>
      %24 = vector.multi_reduction <add>, %23, %cst_18 [1] : vector<8x32xf32> to vector<8xf32>
      %25 = vector.shape_cast %24 : vector<8xf32> to vector<8x1xf32>
      %cst_19 = arith.constant 3.200000e+01 : f32
      %26 = vector.broadcast %cst_19 : f32 to vector<8x1xf32>
      %27 = arith.divf %25, %26 : vector<8x1xf32>
      %28 = vector.broadcast %27 : vector<8x1xf32> to vector<8x32xf32>
      %29 = arith.subf %23, %28 : vector<8x32xf32>
      %30 = arith.mulf %29, %29 : vector<8x32xf32>
      %cst_20 = arith.constant dense<0.000000e+00> : vector<8xf32>
      %31 = vector.multi_reduction <add>, %30, %cst_20 [1] : vector<8x32xf32> to vector<8xf32>
      %32 = vector.shape_cast %31 : vector<8xf32> to vector<8x1xf32>
      %cst_21 = arith.constant 3.200000e+01 : f32
      %33 = vector.broadcast %cst_21 : f32 to vector<8x1xf32>
      %34 = arith.divf %32, %33 : vector<8x1xf32>
      %cst_22 = arith.constant 9.99999996E-13 : f32
      %35 = vector.broadcast %cst_22 : f32 to vector<8x1xf32>
      %36 = arith.addf %34, %35 : vector<8x1xf32>
      %37 = math.rsqrt %36 : vector<8x1xf32>
      %38 = vector.broadcast %37 : vector<8x1xf32> to vector<8x32xf32>
      %39 = arith.mulf %29, %38 : vector<8x32xf32>
      %c0_23 = arith.constant 0 : index
      %c0_24 = arith.constant 0 : index
      %40 = vector.load %arg5[%c0_23, %c0_24] : memref<1x32xf32, #tpu.memory_space<vmem>>, vector<1x32xf32>
      %41 = vector.broadcast %40 : vector<1x32xf32> to vector<8x32xf32>
      %42 = arith.mulf %39, %41 : vector<8x32xf32>
      %c0_25 = arith.constant 0 : index
      %c0_26 = arith.constant 0 : index
      %43 = vector.load %arg6[%c0_25, %c0_26] : memref<1x32xf32, #tpu.memory_space<vmem>>, vector<1x32xf32>
      %44 = vector.broadcast %43 : vector<1x32xf32> to vector<8x32xf32>
      %45 = arith.addf %42, %44 : vector<8x32xf32>
      %c0_27 = arith.constant 0 : index
      %c0_28 = arith.constant 0 : index
      %46 = vector.load %arg10[%c0_27, %c0_28] : memref<8x32xf32, #tpu.memory_space<vmem>>, vector<8x32xf32>
      tpu.vector_store %arg10[%c0_27, %c0_28], %45 {strides = array<i32>} : memref<8x32xf32, #tpu.memory_space<vmem>>, vector<8x32xf32>,
    } else {
    }
    %c0 = arith.constant 0 : index
    %c0_1 = arith.constant 0 : index
    %3 = vector.load %arg10[%c0, %c0_1] : memref<8x32xf32, #tpu.memory_space<vmem>>, vector<8x32xf32>
    %c0_2 = arith.constant 0 : index
    %c0_3 = arith.constant 0 : index
    %4 = vector.load %arg7[%c0_2, %c0_3] : memref<256x32xf32, #tpu.memory_space<vmem>>, vector<256x32xf32>
    %cst = arith.constant dense<0.000000e+00> : vector<8x256xf32>
    %5 = tpu.matmul %3, %4, %cst {dimension_numbers = #tpu.dot_dimension_numbers<[1], [1], [0], [0], [0, 0, 1, 0], [], []>, precision = #tpu.contract_precision<fp32>} : vector<8x32xf32>, vector<256x32xf32>, vector<8x256xf32> -> vector<8x256xf32>
    %c0_4 = arith.constant 0 : index
    %c0_5 = arith.constant 0 : index
    %6 = vector.load %arg8[%c0_4, %c0_5] : memref<1x256xf32, #tpu.memory_space<vmem>>, vector<1x256xf32>
    %7 = vector.broadcast %6 : vector<1x256xf32> to vector<8x256xf32>
    %8 = arith.addf %5, %7 : vector<8x256xf32>
    %c0_6 = arith.constant 0 : index
    %c0_7 = arith.constant 0 : index
    %9 = vector.load %arg9[%c0_6, %c0_7] : memref<8x256xf32, #tpu.memory_space<vmem>>, vector<8x256xf32>
    tpu.vector_store %arg9[%c0_6, %c0_7], %8 {strides = array<i32>} : memref<8x256xf32, #tpu.memory_space<vmem>>, vector<8x256xf32>,
    return
  }
  func.func @transform_0(%arg0: i32, %arg1: i32) -> (i32, i32) {
    %c0_i32 = arith.constant 0 : i32
    %c0_i32_0 = arith.constant 0 : i32
    return %arg0, %c0_i32 : i32, i32
  }
  func.func @transform_1(%arg0: i32, %arg1: i32) -> (i32, i32) {
    %c0_i32 = arith.constant 0 : i32
    %c0_i32_0 = arith.constant 0 : i32
    %c0_i32_1 = arith.constant 0 : i32
    return %c0_i32, %c0_i32_0 : i32, i32
  }
  func.func @transform_2(%arg0: i32, %arg1: i32) -> (i32, i32) {
    %c0_i32 = arith.constant 0 : i32
    %c0_i32_0 = arith.constant 0 : i32
    %c0_i32_1 = arith.constant 0 : i32
    return %c0_i32, %c0_i32_0 : i32, i32
  }
  func.func @transform_3(%arg0: i32, %arg1: i32) -> (i32, i32) {
    %c0_i32 = arith.constant 0 : i32
    %c0_i32_0 = arith.constant 0 : i32
    %c0_i32_1 = arith.constant 0 : i32
    return %c0_i32, %c0_i32_0 : i32, i32
  }
  func.func @transform_4(%arg0: i32, %arg1: i32) -> (i32, i32) {
    %c0_i32 = arith.constant 0 : i32
    %c0_i32_0 = arith.constant 0 : i32
    %c0_i32_1 = arith.constant 0 : i32
    return %c0_i32, %c0_i32_0 : i32, i32
  }
  func.func @transform_5(%arg0: i32, %arg1: i32) -> (i32, i32) {
    %c0_i32 = arith.constant 0 : i32
    %c0_i32_0 = arith.constant 0 : i32
    return %arg1, %c0_i32 : i32, i32
  }
  func.func @transform_6(%arg0: i32, %arg1: i32) -> (i32, i32) {
    %c0_i32 = arith.constant 0 : i32
    %c0_i32_0 = arith.constant 0 : i32
    return %c0_i32, %arg1 : i32, i32
  }
  func.func @transform_7(%arg0: i32, %arg1: i32) -> (i32, i32) {
    %c0_i32 = arith.constant 0 : i32
    return %arg0, %arg1 : i32, i32
  }
}

module attributes {stable_mosaic.version = 11 : i64} {
  func.func @_mlm_head_kernel(%arg0: i32, %arg1: i32, %arg2: memref<8x32xf32, #tpu.memory_space<vmem>>, %arg3: memref<32x32xf32, #tpu.memory_space<vmem>>, %arg4: memref<1x32xf32, #tpu.memory_space<vmem>>, %arg5: memref<1x32xf32, #tpu.memory_space<vmem>>, %arg6: memref<1x32xf32, #tpu.memory_space<vmem>>, %arg7: memref<256x32xf32, #tpu.memory_space<vmem>>, %arg8: memref<1x256xf32, #tpu.memory_space<vmem>>, %arg9: memref<8x256xf32, #tpu.memory_space<vmem>>, %arg10: memref<8x32xf32, #tpu.memory_space<vmem>>) attributes {dimension_semantics = [#tpu.dimension_semantics<parallel>, #tpu.dimension_semantics<arbitrary>], iteration_bounds = array<i64: 2, 1>, scalar_prefetch = 0 : i64, scratch_operands = 1 : i64, tpu.core_type = #tpu.core_type<tc>, window_params = [{transform_indices = @transform_0, window_bounds = array<i64: 8, 32>}, {pipeline_mode = #tpu.pipeline_mode<synchronous>, transform_indices = @transform_1, window_bounds = array<i64: 32, 32>}, {pipeline_mode = #tpu.pipeline_mode<synchronous>, transform_indices = @transform_2, window_bounds = array<i64: 1, 32>}, {pipeline_mode = #tpu.pipeline_mode<synchronous>, transform_indices = @transform_3, window_bounds = array<i64: 1, 32>}, {pipeline_mode = #tpu.pipeline_mode<synchronous>, transform_indices = @transform_4, window_bounds = array<i64: 1, 32>}, {transform_indices = @transform_5, window_bounds = array<i64: 256, 32>}, {transform_indices = @transform_6, window_bounds = array<i64: 1, 256>}, {transform_indices = @transform_7, window_bounds = array<i64: 8, 256>}]} {
    %c0_i32 = arith.constant 0 : i32
    %0 = arith.cmpi eq, %arg1, %c0_i32 : i32
    %1 = arith.extui %0 : i1 to i32
    %c0_i32_0 = arith.constant 0 : i32
    %2 = arith.cmpi ne, %1, %c0_i32_0 : i32
    scf.if %2 {
      %c0_8 = arith.constant 0 : index
      %c0_9 = arith.constant 0 : index
      %10 = vector.load %arg2[%c0_8, %c0_9] : memref<8x32xf32, #tpu.memory_space<vmem>>, vector<8x32xf32>
      %c0_10 = arith.constant 0 : index
      %c0_11 = arith.constant 0 : index
      %11 = vector.load %arg3[%c0_10, %c0_11] : memref<32x32xf32, #tpu.memory_space<vmem>>, vector<32x32xf32>
      %cst_12 = arith.constant dense<0.000000e+00> : vector<8x32xf32>
      %12 = tpu.matmul %10, %11, %cst_12 {dimension_numbers = #tpu.dot_dimension_numbers<[1], [1], [0], [0], [0, 0, 1, 0], [], []>, precision = #tpu.contract_precision<fp32>} : vector<8x32xf32>, vector<32x32xf32>, vector<8x32xf32> -> vector<8x32xf32>
      %c0_13 = arith.constant 0 : index
      %c0_14 = arith.constant 0 : index
      %13 = vector.load %arg4[%c0_13, %c0_14] : memref<1x32xf32, #tpu.memory_space<vmem>>, vector<1x32xf32>
      %14 = vector.broadcast %13 : vector<1x32xf32> to vector<8x32xf32>
      %15 = arith.addf %12, %14 : vector<8x32xf32>
      %cst_15 = arith.constant 5.000000e-01 : f32
      %16 = vector.broadcast %cst_15 : f32 to vector<8x32xf32>
      %17 = arith.mulf %15, %16 : vector<8x32xf32>
      %cst_16 = arith.constant 0.707106769 : f32
      %18 = vector.broadcast %cst_16 : f32 to vector<8x32xf32>
      %19 = arith.mulf %15, %18 : vector<8x32xf32>
      %20 = math.erf %19 : vector<8x32xf32>
      %cst_17 = arith.constant 1.000000e+00 : f32
      %21 = vector.broadcast %cst_17 : f32 to vector<8x32xf32>
      %22 = arith.addf %21, %20 : vector<8x32xf32>
      %23 = arith.mulf %17, %22 : vector<8x32xf32>
      %cst_18 = arith.constant dense<0.000000e+00> : vector<8xf32>
      %24 = vector.multi_reduction <add>, %23, %cst_18 [1] : vector<8x32xf32> to vector<8xf32>
      %25 = vector.shape_cast %24 : vector<8xf32> to vector<8x1xf32>
      %cst_19 = arith.constant 3.200000e+01 : f32
      %26 = vector.broadcast %cst_19 : f32 to vector<8x1xf32>
      %27 = arith.divf %25, %26 : vector<8x1xf32>
      %28 = vector.broadcast %27 : vector<8x1xf32> to vector<8x32xf32>
      %29 = arith.subf %23, %28 : vector<8x32xf32>
      %30 = arith.mulf %29, %29 : vector<8x32xf32>
      %cst_20 = arith.constant dense<0.000000e+00> : vector<8xf32>
      %31 = vector.multi_reduction <add>, %30, %cst_20 [1] : vector<8x32xf32> to vector<8xf32>
      %32 = vector.shape_cast %31 : vector<8xf32> to vector<8x1xf32>
      %cst_21 = arith.constant 3.200000e+01 : f32
      %33 = vector.broadcast %cst_21 : f32 to vector<8x1xf32>
      %34 = arith.divf %32, %33 : vector<8x1xf32>
      %cst_22 = arith.constant 9.99999996E-13 : f32
      %35 = vector.broadcast %cst_22 : f32 to vector<8x1xf32>
      %36 = arith.addf %34, %35 : vector<8x1xf32>
      %37 = math.rsqrt %36 : vector<8x1xf32>
      %38 = vector.broadcast %37 : vector<8x1xf32> to vector<8x32xf32>
      %39 = arith.mulf %29, %38 : vector<8x32xf32>
      %c0_23 = arith.constant 0 : index
      %c0_24 = arith.constant 0 : index
      %40 = vector.load %arg5[%c0_23, %c0_24] : memref<1x32xf32, #tpu.memory_space<vmem>>, vector<1x32xf32>
      %41 = vector.broadcast %40 : vector<1x32xf32> to vector<8x32xf32>
      %42 = arith.mulf %39, %41 : vector<8x32xf32>
      %c0_25 = arith.constant 0 : index
      %c0_26 = arith.constant 0 : index
      %43 = vector.load %arg6[%c0_25, %c0_26] : memref<1x32xf32, #tpu.memory_space<vmem>>, vector<1x32xf32>
      %44 = vector.broadcast %43 : vector<1x32xf32> to vector<8x32xf32>
      %45 = arith.addf %42, %44 : vector<8x32xf32>
      %c0_27 = arith.constant 0 : index
      %c0_28 = arith.constant 0 : index
      %46 = vector.load %arg10[%c0_27, %c0_28] : memref<8x32xf32, #tpu.memory_space<vmem>>, vector<8x32xf32>
      tpu.vector_store %arg10[%c0_27, %c0_28], %45 {strides = array<i32>} : memref<8x32xf32, #tpu.memory_space<vmem>>, vector<8x32xf32>,
    } else {
    }
    %c0 = arith.constant 0 : index
    %c0_1 = arith.constant 0 : index
    %3 = vector.load %arg10[%c0, %c0_1] : memref<8x32xf32, #tpu.memory_space<vmem>>, vector<8x32xf32>
    %c0_2 = arith.constant 0 : index
    %c0_3 = arith.constant 0 : index
    %4 = vector.load %arg7[%c0_2, %c0_3] : memref<256x32xf32, #tpu.memory_space<vmem>>, vector<256x32xf32>
    %cst = arith.constant dense<0.000000e+00> : vector<8x256xf32>
    %5 = tpu.matmul %3, %4, %cst {dimension_numbers = #tpu.dot_dimension_numbers<[1], [1], [0], [0], [0, 0, 1, 0], [], []>, precision = #tpu.contract_precision<fp32>} : vector<8x32xf32>, vector<256x32xf32>, vector<8x256xf32> -> vector<8x256xf32>
    %c0_4 = arith.constant 0 : index
    %c0_5 = arith.constant 0 : index
    %6 = vector.load %arg8[%c0_4, %c0_5] : memref<1x256xf32, #tpu.memory_space<vmem>>, vector<1x256xf32>
    %7 = vector.broadcast %6 : vector<1x256xf32> to vector<8x256xf32>
    %8 = arith.addf %5, %7 : vector<8x256xf32>
    %c0_6 = arith.constant 0 : index
    %c0_7 = arith.constant 0 : index
    %9 = vector.load %arg9[%c0_6, %c0_7] : memref<8x256xf32, #tpu.memory_space<vmem>>, vector<8x256xf32>
    tpu.vector_store %arg9[%c0_6, %c0_7], %8 {strides = array<i32>} : memref<8x256xf32, #tpu.memory_space<vmem>>, vector<8x256xf32>,
    return
  }
  func.func @transform_0(%arg0: i32, %arg1: i32) -> (i32, i32) {
    %c0_i32 = arith.constant 0 : i32
    %c0_i32_0 = arith.constant 0 : i32
    return %arg0, %c0_i32 : i32, i32
  }
  func.func @transform_1(%arg0: i32, %arg1: i32) -> (i32, i32) {
    %c0_i32 = arith.constant 0 : i32
    %c0_i32_0 = arith.constant 0 : i32
    %c0_i32_1 = arith.constant 0 : i32
    return %c0_i32, %c0_i32_0 : i32, i32
  }
  func.func @transform_2(%arg0: i32, %arg1: i32) -> (i32, i32) {
    %c0_i32 = arith.constant 0 : i32
    %c0_i32_0 = arith.constant 0 : i32
    %c0_i32_1 = arith.constant 0 : i32
    return %c0_i32, %c0_i32_0 : i32, i32
  }
  func.func @transform_3(%arg0: i32, %arg1: i32) -> (i32, i32) {
    %c0_i32 = arith.constant 0 : i32
    %c0_i32_0 = arith.constant 0 : i32
    %c0_i32_1 = arith.constant 0 : i32
    return %c0_i32, %c0_i32_0 : i32, i32
  }
  func.func @transform_4(%arg0: i32, %arg1: i32) -> (i32, i32) {
    %c0_i32 = arith.constant 0 : i32
    %c0_i32_0 = arith.constant 0 : i32
    %c0_i32_1 = arith.constant 0 : i32
    return %c0_i32, %c0_i32_0 : i32, i32
  }
  func.func @transform_5(%arg0: i32, %arg1: i32) -> (i32, i32) {
    %c0_i32 = arith.constant 0 : i32
    %c0_i32_0 = arith.constant 0 : i32
    return %arg1, %c0_i32 : i32, i32
  }
  func.func @transform_6(%arg0: i32, %arg1: i32) -> (i32, i32) {
    %c0_i32 = arith.constant 0 : i32
    %c0_i32_0 = arith.constant 0 : i32
    return %c0_i32, %arg1 : i32, i32
  }
  func.func @transform_7(%arg0: i32, %arg1: i32) -> (i32, i32) {
    %c0_i32 = arith.constant 0 : i32
    return %arg0, %arg1 : i32, i32
  }
}

</mosaic_0001>

<bundles_post_ra>
// kernel: tpu_custom_call.1
= control target key start
LH: loop header
LB: loop body
LE: loop exit
PB: predicated region body
PF: predicated region fallthrough
CT: control target
= control target key end

     0   :  { %12 = vsyncpa [#allocation4], 0  ;;  %s3426_s0 = inlined_call_operand.vmem [shape: f32[16,32], index: 0, kind: input, shape index: {}]   ;;  %s3427_s1 = inlined_call_operand.vmem [shape: f32[32,32], index: 1, kind: input, shape index: {}]   ;;  %s3428_s2 = inlined_call_operand.vmem [shape: f32[1,32], index: 2, kind: input, shape index: {}]   ;;  %s3429_s3 = inlined_call_operand.vmem [shape: f32[1,32], index: 3, kind: input, shape index: {}]   ;;  %s3430_s4 = inlined_call_operand.vmem [shape: f32[1,32], index: 4, kind: input, shape index: {}]   ;;  %s3431_s5 = inlined_call_operand.vmem [shape: f32[256,32], index: 5, kind: input, shape index: {}]   ;;  %s3432_s6 = inlined_call_operand.vmem [shape: f32[1,256], index: 6, kind: input, shape index: {}]   ;;  %s3433_s7 = inlined_call_operand.hbm [shape: f32[16,256], index: 7, kind: output, shape index: {}]  }
   0x1   :  { %14 = vsyncpa [#allocation4 + $0x1], 0  ;;  %s2754_s24 = smov 0   ;;  %s2756_s25 = smov 0  }
   0x2   :  { %s2758_s26 = smov 0   ;;  %s2760_s27 = smov 0  }
   0x3   :  { %s2762_s28 = smov 0   ;;  %s2764_s29 = smov 0  }
   0x4 LB: > { %s1999_s30 = sadd.s32 4294967295, %s2708_s29   ;;  %s2000_s8 = sadd.s32 4294967294, %s2708_s29   ;;  %s2708_s29 = sphi %s2764_s29, %s20_s29   ;;  %s2704_s28 = sphi %s2762_s28, %s3499_s28   ;;  %s2700_s27 = sphi %s2760_s27, %s3498_s27   ;;  %s2696_s26 = sphi %s2758_s26, %s3497_s26   ;;  %s2692_s25 = sphi %s2756_s25, %s3496_s25   ;;  %s2688_s24 = sphi %s2754_s24, %s3495_s24  }
   0x5   : > { %s32_s9 = sadd.s32 1, %s2704_s28  ;;  %s203_s10 = sadd.s32 1, %s2696_s26 }
   0x6   : > { %p34_p0 = scmp.ge.s32.totalorder %s32_s9, 2  ;;  %p213_p1 = scmp.ne.s32.totalorder %s2696_s26, %s2692_s25 }
   0x7   : > { %p214_p2 = scmp.eq.s32.totalorder %s1999_s30, 1  ;;  %p219_p3 = scmp.ne.s32.totalorder %s2692_s25, %s2688_s24 }
   0x8   : > { %s3501_s9 = smov (%p34_p0, %s32_s9), 0  ;;  %p220_p5 = scmp.eq.s32.totalorder %s2000_s8, 1 }
   0x9   : > { %p2794_p4 = por %p214_p2, %p213_p1  ;;  %s198_s12 = ssub.s32 %s2704_s28, %s3501_s9 }
   0xa   : > { %p2005_p6 = scmp.ge.s32.totalorder %s2708_s29, 1  ;;  %p201_p7 = scmp.eq.s32.totalorder %s198_s12, 0 }
   0xb   : > { %p2801_p8 = por %p220_p5, %p219_p3  ;;  %p274_p9 = scmp.lt.s32.totalorder %s2708_s29, 3 }
   0xc   : > { %s2807_s14 = scalar_select %p201_p7, %s2696_s26, %s203_s10  }
   0xd   : > { %p275_p10 = pnand %p2005_p6, %p274_p9 }
   0xf   : > { %278 = sbr.rel (%p275_p10) target bundleno = 1102 (0x44e), region = 48 }
  0x16   : > { %v335_v0 = vld [vmem:[%s3427_s1] sm:$0xff]  ;;  %v336_v1 = vld [vmem:[%s3427_s1 + $0x8] sm:$0xff]  ;;  %vm346_vm0 = vcmask 261120   ;;  %v337_v2 = vld [vmem:[%s3427_s1 + $0x10] sm:$0xff]  ;;  %v2710_v3 = vmov 0.0|0.0   ;;  %p314_p11 = scmp.lt.s32.totalorder %s2700_s27, 1 }
  0x17   : > { %2317 = vmatprep.subr.bf16.mxu0 %v2710_v3  ;;  %v351_v4 = vsel %vm346_vm0, %v335_v0, 0  ;;  %v354_v5 = vsel %vm346_vm0, %v336_v1, 0  ;;  %v338_v6 = vld [vmem:[%s3427_s1 + $0x18] sm:$0xff]  ;;  %vm2711_vm1 = vmmov 0   ;;  %v2712_v9 = vmov 0.0   ;;  %v900_v55 = vld [vmem:[%s3431_s5 + $0x80] sm:$0xff] }
  0x18   : > { %v363_v7 = vand.u32 4294901760, %v351_v4  ;;  %v366_v8 = vand.u32 4294901760, %v354_v5  ;;  %2259 = vmatprep.mubr.msk.f32.mxu0 %vm2711_vm1, %v2712_v9  ;;  %v357_v10 = vsel %vm346_vm0, %v337_v2, 0  ;;  %v360_v11 = vsel %vm346_vm0, %v338_v6, 0  ;;  %s315_s23 = scalar_select %p314_p11, %s2700_s27, 1  ;;  %v901_v56 = vld [vmem:[%s3431_s5 + $0x88] sm:$0xff] }
  0x19   : > { %v369_v15 = vand.u32 4294901760, %v357_v10  ;;  %v372_v16 = vand.u32 4294901760, %v360_v11  ;;  %v2008_v45 = vld [vmem:[%s3428_s2] ss:$0 sm:$0xff]  ;;  %v981_v58 = vsel %vm346_vm0, %v900_v55, 0  ;;  %v984_v59 = vsel %vm346_vm0, %v901_v56, 0 }
  0x1a   : > { %v2830_v12 = vpack.c.bf16 %v366_v8, %v363_v7  ;;  %v443_v13 = vsub.f32 %v351_v4, %v363_v7  ;;  %v450_v14 = vsub.f32 %v354_v5, %v366_v8  ;;  %s2007_s30 = sshll.u32 %s315_s23, 3  ;;  %v884_v57 = vld [vmem:[%s3431_s5] sm:$0xff]  ;;  %v885_v60 = vld [vmem:[%s3431_s5 + $0x8] sm:$0xff]  ;;  %v902_v62 = vld [vmem:[%s3431_s5 + $0x90] sm:$0xff]  ;;  %v1077_v0 = vand.u32 4294901760, %v981_v58  ;;  %s311_s20 = sand.u32 1, %s2692_s25  }
  0x1b   : > { %s317_s12 = scalar_lea.vmem %s3426_s0, %s2007_s30  ;;  %v457_v21 = vsub.f32 %v357_v10, %v369_v15  ;;  %v2321_v23 = vpack.c.bf16 %v372_v16, %v369_v15  ;;  %v464_v24 = vsub.f32 %v360_v11, %v372_v16  ;;  %v933_v61 = vsel %vm346_vm0, %v884_v57, 0  ;;  %v903_v63 = vld [vmem:[%s3431_s5 + $0x98] sm:$0xff]  ;;  %v886_v4 = vld [vmem:[%s3431_s5 + $0x10] sm:$0xff]  ;;  %s2006_s23 = sshll.u32 %s311_s20, 4 }
  0x1c   : > { %2319 = vmatpush3.bf16.xpose.msra.mxu0 %v2830_v12  ;;  %v444_v17 = vand.u32 4294901760, %v443_v13  ;;  %v451_v18 = vand.u32 4294901760, %v450_v14  ;;  %v334_v19 = vld [vmem:[%s317_s12] sm:$0xff]  ;;  %v2330_v41 = vpack.c.bf16 %v450_v14, %v443_v13  ;;  %v1080_v1 = vand.u32 4294901760, %v984_v59  ;;  %v887_v8 = vld [vmem:[%s3431_s5 + $0x18] sm:$0xff]  ;;  %s2016_s30 = sshll.u32 %s2700_s27, 8 }
  0x1d   : > { %2320 = vmatprep.subr.bf16.mxu0 %v2710_v3  ;;  %v348_v20 = vsel %vm346_vm0, %v334_v19, 0  ;;  %v458_v31 = vand.u32 4294901760, %v457_v21  ;;  %v465_v32 = vand.u32 4294901760, %v464_v24  ;;  %v2333_v42 = vpack.c.bf16 %v464_v24, %v457_v21  ;;  %v891_v55 = vld [vmem:[%s3431_s5 + $0x38] sm:$0xff]  ;;  %s313_s8 = scalar_lea.vmem [#allocation3], %s2006_s23  ;;  %s3379_s16 = scalar_lea.hbm %s3433_s7, %s2016_s30 }
  0x1e   : > { %v431_v22 = vand.u32 4294901760, %v348_v20  ;;  %v445_v25 = vsub.f32 %v443_v13, %v444_v17  ;;  %v452_v26 = vsub.f32 %v450_v14, %v451_v18  ;;  %v2342_v43 = vpack.c.bf16 %v451_v18, %v444_v17  ;;  %v904_v18 = vld [vmem:[%s3431_s5 + $0xa0] sm:$0xff]  ;;  %s1902_s10 = sshll.u32 %s313_s8, 4  ;;  %s1886_s27 = scalar_lea.sflag [#allocation4], %s311_s20  ;;  %s3381_s10 = int_to_ptr.vmem [resolvable:$true] %s1902_s10 }
  0x1f   : > { %v459_v36 = vsub.f32 %v457_v21, %v458_v31  ;;  %v466_v37 = vsub.f32 %v464_v24, %v465_v32  ;;  %v2345_v44 = vpack.c.bf16 %v465_v32, %v458_v31  ;;  %v936_v2 = vsel %vm346_vm0, %v885_v60, 0  ;;  %v906_v31 = vld [vmem:[%s3431_s5 + $0xb0] sm:$0xff]  ;;  %s2630_s17 = scalar_lea.vmem %s3381_s10, 256  ;;  %s2713_s18 = smov [#allocation3]  }
  0x20   : > { %v432_v27 = vsub.f32 %v348_v20, %v431_v22  ;;  %v446_v29 = vand.u32 4294901760, %v445_v25  ;;  %v453_v30 = vand.u32 4294901760, %v452_v26  ;;  %v1032_v5 = vand.u32 4294901760, %v936_v2  ;;  %v888_v26 = vld [vmem:[%s3431_s5 + $0x20] sm:$0xff]  ;;  %p2631_p12 = scmp.ne.s32.totalorder %s3381_s10, %s2630_s17  ;;  %s2634_s19 = sshll.u32 %s2713_s18, 4  ;;  %s2635_s19 = int_to_ptr.vmem [resolvable:$false] %s2634_s19 }
  0x21   : > { %v460_v38 = vand.u32 4294901760, %v459_v36  ;;  %v467_v39 = vand.u32 4294901760, %v466_v37  ;;  %v987_v6 = vsel %vm346_vm0, %v902_v62, 0  ;;  %v990_v7 = vsel %vm346_vm0, %v903_v63, 0  ;;  %v907_v36 = vld [vmem:[%s3431_s5 + $0xb8] sm:$0xff]  ;;  %s2636_s21 = scalar_lea.vmem %s2635_s19, 512  ;;  %p2637_p1 = scmp.lt.s32.totalorder %s3381_s10, %s2635_s19 }
  0x22   : > { %v433_v28 = vand.u32 4294901760, %v432_v27  ;;  %v2324_v35 = vpack.c.bf16 %v453_v30, %v446_v29  ;;  %v2898_v10 = vsub.f32 %v981_v58, %v1077_v0  ;;  %v2900_v11 = vsub.f32 %v984_v59, %v1080_v1  ;;  %p2632_p13 = pnand %p2631_p12, %p2794_p4  ;;  %p2638_p2 = scmp.lt.s32.totalorder %s2636_s21, %s2630_s17 }
  0x23   : > { %v2327_v40 = vpack.c.bf16 %v467_v39, %v460_v38  ;;  %v2904_v13 = vpack.c.bf16 %v1080_v1, %v1077_v0  ;;  %v2906_v14 = vsub.f32 %v936_v2, %v1032_v5  ;;  %v1083_v16 = vand.u32 4294901760, %v987_v6 }
  0x24   : > { %2322 = vmatpush3.bf16.xpose.msra.mxu0 %v2321_v23  ;;  %v434_v33 = vsub.f32 %v432_v27, %v433_v28  ;;  %v1086_v17 = vand.u32 4294901760, %v990_v7  ;;  %v2417_v19 = vpack.c.bf16 %v2900_v11, %v2898_v10  ;;  %v942_v20 = vsel %vm346_vm0, %v887_v8, 0  ;;  %p2633_p0 = pneg %p2632_p13  ;;  %p2639_p3 = por %p2638_p2, %p2637_p1 }
  0x25   : > { %2323 = vmatprep.subr.bf16.mxu0 %v2710_v3  ;;  %v2923_v24 = vsub.f32 %v987_v6, %v1083_v16  ;;  %v993_v30 = vsel %vm346_vm0, %v904_v18, 0  ;;  %v945_v39 = vsel %vm346_vm0, %v888_v26, 0  ;;  %v909_v18 = vld [vmem:[%s3431_s5 + $0xc8] sm:$0xff] }
  0x26   : > { %v435_v34 = vand.u32 4294901760, %v434_v33  ;;  %v2925_v25 = vsub.f32 %v990_v7, %v1086_v17  ;;  %2418 = vmatprep.subr.bf16.mxu1 %v2417_v19  ;;  %v2933_v29 = vpack.c.bf16 %v1086_v17, %v1083_v16  ;;  %v908_v17 = vld [vmem:[%s3431_s5 + $0xc0] sm:$0xff]  ;;  %p2640_p5 = pnand %p2639_p3, %p2633_p0 }
  0x27   : > { %v1005_v19 = vsel %vm346_vm0, %v908_v17, 0  ;;  %v913_v17 = vld [vmem:[%s3431_s5 + $0xe8] sm:$0xff] }
  0x28   : > { %v2421_v32 = vpack.c.bf16 %v2925_v25, %v2923_v24 }
  0x2b   : > { %2260 = vmatmul.mubr.f32.vlgmr.msra.gmra.mrb[0].mxu0 %v435_v34 }
  0x2c   : > { %2325 = vmatpush3.bf16.xpose.msra.mxu0 %v2324_v35  ;;  %2270 = vmatprep.mubr.msk.f32.mxu0 %vm2711_vm1, %v2712_v9  ;;  %v1089_v35 = vand.u32 4294901760, %v993_v30 }
  0x2d   : > { %2326 = vmatprep.subr.bf16.mxu0 %v2710_v3 }
  0x34   : > { %2328 = vmatpush3.bf16.xpose.msra.mxu0 %v2327_v40 }
  0x35   : > { %2329 = vmatprep.subr.bf16.mxu0 %v2710_v3 }
  0x3b   : > { %2271 = vmatmul.mubr.f32.vlgmr.msra.gmra.mrb[0].mxu0 %v431_v22 }
  0x3c   : > { %2331 = vmatpush3.bf16.xpose.msra.mxu0 %v2330_v41  ;;  %2281 = vmatprep.mubr.msk.f32.mxu0 %vm2711_vm1, %v2712_v9 }
  0x3d   : > { %2332 = vmatprep.subr.bf16.mxu0 %v2710_v3 }
  0x44   : > { %2334 = vmatpush3.bf16.xpose.msra.mxu0 %v2333_v42  ;;  %v2954_v42 = vsub.f32 %v993_v30, %v1089_v35 }
  0x45   : > { %2335 = vmatprep.subr.bf16.mxu0 %v2710_v3 }
  0x4b   : > { %2282 = vmatmul.mubr.f32.vlgmr.msra.gmra.mrb[0].mxu0 %v432_v27  ;;  %v889_v27 = vld [vmem:[%s3431_s5 + $0x28] sm:$0xff] }
  0x4c   : > { %2337 = vmatpush3.bf16.xpose.msra.mxu0 %v2830_v12  ;;  %2292 = vmatprep.mubr.msk.f32.mxu0 %vm2711_vm1, %v2712_v9  ;;  %v948_v40 = vsel %vm346_vm0, %v889_v27, 0 }
  0x4d   : > { %2338 = vmatprep.subr.bf16.mxu0 %v2710_v3 }
  0x54   : > { %2340 = vmatpush3.bf16.xpose.msra.mxu0 %v2321_v23 }
  0x55   : > { %2341 = vmatprep.subr.bf16.mxu0 %v2710_v3 }
  0x5b   : > { %2293 = vmatmul.mubr.f32.vlgmr.msra.gmra.mrb[0].mxu0 %v433_v28  ;;  %v1038_v28 = vand.u32 4294901760, %v942_v20 }
  0x5c   : > { %2343 = vmatpush3.bf16.xpose.msra.mxu0 %v2342_v43  ;;  %2303 = vmatprep.mubr.msk.f32.mxu0 %vm2711_vm1, %v2712_v9  ;;  %v999_v43 = vsel %vm346_vm0, %v906_v31, 0 }
  0x5d   : > { %2344 = vmatprep.subr.bf16.mxu0 %v2710_v3  ;;  %v2947_v37 = vsub.f32 %v942_v20, %v1038_v28  ;;  %v1008_v20 = vsel %vm346_vm0, %v909_v18, 0 }
  0x64   : > { %2346 = vmatpush3.bf16.xpose.msra.mxu0 %v2345_v44 }
  0x65   : > { %2347 = vmatprep.subr.bf16.mxu0 %v2710_v3 }
  0x6b   : > { %2304 = vmatmul.mubr.f32.vlgmr.msra.gmra.mrb[0].mxu0 %v431_v22 }
  0x6c   : > { %2349 = vmatpush3.bf16.xpose.msra.mxu0 %v2830_v12  ;;  %2314 = vmatprep.mubr.msk.f32.mxu0 %vm2711_vm1, %v2712_v9  ;;  %v939_v9 = vsel %vm346_vm0, %v886_v4, 0 }
  0x6d   : > { %2350 = vmatprep.subr.bf16.mxu0 %v2710_v3  ;;  %v1029_v3 = vand.u32 4294901760, %v933_v61  ;;  %v1035_v21 = vand.u32 4294901760, %v939_v9 }
  0x6f   : > { %v2902_v12 = vsub.f32 %v933_v61, %v1029_v3  ;;  %v2908_v15 = vpack.c.bf16 %v1032_v5, %v1029_v3  ;;  %v2941_v33 = vsub.f32 %v939_v9, %v1035_v21  ;;  %v2952_v41 = vpack.c.bf16 %v1038_v28, %v1035_v21  ;;  %v893_v21 = vld [vmem:[%s3431_s5 + $0x48] sm:$0xff] }
  0x70   : > { %v954_v61 = vsel %vm346_vm0, %v891_v55, 0  ;;  %v960_v27 = vsel %vm346_vm0, %v893_v21, 0 }
  0x71   : > { %3463 = vst [vmem:[#allocation6_spill] sm:$0xff] %v2908_v15  ;;  %v1050_v1 = vand.u32 4294901760, %v954_v61  ;;  %v1056_v30 = vand.u32 4294901760, %v960_v27 }
  0x73   : > { %v2993_v4 = vsub.f32 %v954_v61, %v1050_v1 }
  0x74   : > { %2352 = vmatpush3.bf16.xpose.msra.mxu0 %v2321_v23  ;;  %v2419_v23 = vpack.c.bf16 %v2906_v14, %v2902_v12 }
  0x75   : > { %2354 = vmatprep.subr.bf16.mxu0 %v2904_v13 }
  0x76   : > { %2420 = vmatpush3.bf16.xpose.msra.mxu1 %v2419_v23  ;;  %v1104_v23 = vand.u32 4294901760, %v1008_v20 }
  0x77   : > { %2422 = vmatprep.subr.bf16.mxu1 %v2421_v32 }
  0x7b   : > { %2315 = vmatmul.mubr.f32.vlgmr.msra.gmra.mrb[0].mxu0 %v431_v22  ;;  %v905_v22 = vld [vmem:[%s3431_s5 + $0xa8] sm:$0xff] }
  0x7c   : > { %2356 = vmatpush3.bf16.xpose.msra.mxu0 %v2908_v15  ;;  %v996_v34 = vsel %vm346_vm0, %v905_v22, 0  ;;  %v1101_v22 = vand.u32 4294901760, %v1005_v19 }
  0x7d   : > { %2358 = vmatprep.subr.bf16.mxu0 %v2933_v29  ;;  %v1092_v38 = vand.u32 4294901760, %v996_v34 }
  0x7e   : > { %v3021_v32 = vsub.f32 %v1005_v19, %v1101_v22  ;;  %v1020_v19 = vsel %vm346_vm0, %v913_v17, 0 }
  0x7f   : > { %v2957_v44 = vsub.f32 %v996_v34, %v1092_v38  ;;  %v3023_v34 = vsub.f32 %v1008_v20, %v1104_v23  ;;  %v896_v20 = vld [vmem:[%s3431_s5 + $0x60] sm:$0xff] }
  0x84   : > { %2360 = vmatpush3.bf16.xpose.msra.mxu0 %v2952_v41 }
 0x14e   : > { %v843_v46 = vpop.f32.mrb[0].mxu0 }
 0x14f   : > { %v2545_v47 = vadd.f32 %v2008_v45, %v843_v46  ;;  %v2316_v48 = vpop.f32.mrb[1].mxu0  ;;  %v2959_v45 = vpack.c.bf16 %v1092_v38, %v1089_v35  ;;  %v1002_v46 = vsel %vm346_vm0, %v907_v36, 0  ;;  %v3029_v38 = vsub.f32 %v960_v27, %v1056_v30 }
 0x150   : > { %v1041_v48 = vand.u32 4294901760, %v945_v39 }
 0x151   : > { %v848_v49 = vmul.f32 0.70710677, %v2545_v47  ;;  %v847_v51 = vmul.f32 0.5, %v2545_v47  ;;  %3464 = vst [vmem:[#allocation7_spill] sm:$0xff] %v2959_v45  ;;  %v2423_v47 = vpack.c.bf16 %v2947_v37, %v2941_v33  ;;  %2362 = vmatprep.subr.bf16.mxu0 %v2959_v45 }
 0x152   : > { %v2974_v56 = vsub.f32 %v945_v39, %v1041_v48  ;;  %v2433_v39 = vpack.c.bf16 %v3023_v34, %v3021_v32 }
 0x153   : > { %2626 = verf.f32 %v848_v49  ;;  %v1044_v49 = vand.u32 4294901760, %v948_v40  ;;  %2424 = vmatpush3.bf16.xpose.msra.mxu1 %v2423_v47 }
 0x155   : > { %v2976_v57 = vsub.f32 %v948_v40, %v1044_v49  ;;  %v2984_v62 = vpack.c.bf16 %v1044_v49, %v1041_v48  ;;  %v894_v49 = vld [vmem:[%s3431_s5 + $0x50] sm:$0xff] }
 0x157   : > { %v2427_v63 = vpack.c.bf16 %v2976_v57, %v2974_v56  ;;  %2364 = vmatpush3.bf16.xpose.msra.mxu0 %v2984_v62 }
 0x15d   : > { %v2627_v50 = vpop.eup %2626 }
 0x15e   : > { %v850_v52 = vadd.f32 1.0, %v2627_v50  ;;  %v2425_v50 = vpack.c.bf16 %v2957_v44, %v2954_v42 }
 0x160   : > { %v2863_v53 = vmul.f32 %v850_v52, %v847_v51  ;;  %v1095_v51 = vand.u32 4294901760, %v999_v43  ;;  %v1098_v52 = vand.u32 4294901760, %v1002_v46  ;;  %2426 = vmatprep.subr.bf16.mxu1 %v2425_v50  ;;  %v895_v50 = vld [vmem:[%s3431_s5 + $0x58] sm:$0xff] }
 0x161   : > { %2428 = vmatpush3.bf16.xpose.msra.mxu1 %v2427_v63  ;;  %v966_v55 = vsel %vm346_vm0, %v895_v50, 0  ;;  %v3053_v63 = vpack.c.bf16 %v1104_v23, %v1101_v22  ;;  %v1116_v22 = vand.u32 4294901760, %v1020_v19  ;;  %v969_v23 = vsel %vm346_vm0, %v896_v20, 0  ;;  %v914_v50 = vld [vmem:[%s3431_s5 + $0xf0] sm:$0xff] }
 0x162   : > { %v852_v54 = vsel %vm346_vm0, %v2863_v53, 0.0  ;;  %v2978_v58 = vsub.f32 %v999_v43, %v1095_v51  ;;  %v2980_v59 = vsub.f32 %v1002_v46, %v1098_v52  ;;  %v3019_v31 = vpack.c.bf16 %v1098_v52, %v1095_v51  ;;  %v910_v43 = vld [vmem:[%s3431_s5 + $0xd0] sm:$0xff]  ;;  %v911_v46 = vld [vmem:[%s3431_s5 + $0xd8] sm:$0xff] }
 0x163   : > { %853 = vadd.xlane.f32.xlu0 %v852_v54  ;;  %v890_v54 = vld [vmem:[%s3431_s5 + $0x30] sm:$0xff]  ;;  %v1011_v47 = vsel %vm346_vm0, %v910_v43, 0  ;;  %v1014_v48 = vsel %vm346_vm0, %v911_v46, 0  ;;  %v1062_v61 = vand.u32 4294901760, %v966_v55  ;;  %v1065_v27 = vand.u32 4294901760, %v969_v23 }
 0x164   : > { %v951_v60 = vsel %vm346_vm0, %v890_v54, 0  ;;  %v2429_v2 = vpack.c.bf16 %v2980_v59, %v2978_v58  ;;  %2366 = vmatprep.subr.bf16.mxu0 %v3019_v31  ;;  %v1107_v51 = vand.u32 4294901760, %v1011_v47  ;;  %v1110_v52 = vand.u32 4294901760, %v1014_v48 }
 0x165   : > { %v1047_v0 = vand.u32 4294901760, %v951_v60  ;;  %v963_v54 = vsel %vm346_vm0, %v894_v49, 0  ;;  %v3095_v46 = vsub.f32 %v969_v23, %v1065_v27 }
 0x166   : > { %2430 = vmatprep.subr.bf16.mxu1 %v2429_v2 }
 0x167   : > { %v2991_v3 = vsub.f32 %v951_v60, %v1047_v0  ;;  %v3025_v35 = vpack.c.bf16 %v1050_v1, %v1047_v0  ;;  %v1059_v60 = vand.u32 4294901760, %v963_v54  ;;  %v3055_v0 = vsub.f32 %v1011_v47, %v1107_v51 }
 0x168   : > { %v3057_v1 = vsub.f32 %v1014_v48, %v1110_v52 }
 0x169   : > { %v2431_v5 = vpack.c.bf16 %v2993_v4, %v2991_v3  ;;  %2368 = vmatpush3.bf16.xpose.msra.mxu0 %v3025_v35  ;;  %v3093_v43 = vpack.c.bf16 %v1062_v61, %v1059_v60 }
 0x16a   : > { %2370 = vmatprep.subr.bf16.mxu0 %v3053_v63 }
 0x16b   : > { %2432 = vmatpush3.bf16.xpose.msra.mxu1 %v2431_v5  ;;  %v3061_v5 = vsub.f32 %v963_v54, %v1059_v60  ;;  %v899_v60 = vld [vmem:[%s3431_s5 + $0x78] sm:$0xff] }
 0x16c   : > { %2434 = vmatprep.subr.bf16.mxu1 %v2433_v39 }
 0x1f0   : > { %v854_v6 = vpop.xlane.xlu0 %853 }
 0x1f1   : > { %v856_v7 = vmul.f32 0.03125, %v854_v6  ;;  %v3063_v6 = vsub.f32 %v966_v55, %v1062_v61  ;;  %v898_v55 = vld [vmem:[%s3431_s5 + $0x70] sm:$0xff] }
 0x1f3   : > { %v2998_v8 = vsub.f32 %v2863_v53, %v856_v7  ;;  %v892_v53 = vld [vmem:[%s3431_s5 + $0x40] sm:$0xff]  ;;  %v2437_v7 = vpack.c.bf16 %v3057_v1, %v3055_v0 }
 0x1f4   : > { %v957_v26 = vsel %vm346_vm0, %v892_v53, 0  ;;  %v897_v53 = vld [vmem:[%s3431_s5 + $0x68] sm:$0xff] }
 0x1f5   : > { %v858_v9 = vmul.f32 %v2998_v8, %v2998_v8  ;;  %v1053_v28 = vand.u32 4294901760, %v957_v26 }
 0x1f7   : > { %v859_v16 = vsel %vm346_vm0, %v858_v9, 0.0  ;;  %v3027_v36 = vsub.f32 %v957_v26, %v1053_v28  ;;  %v3059_v2 = vpack.c.bf16 %v1056_v30, %v1053_v28  ;;  %v2439_v9 = vpack.c.bf16 %v3063_v6, %v3061_v5 }
 0x1f8   : > { %860 = vadd.xlane.f32.xlu0 %v859_v16  ;;  %v912_v16 = vld [vmem:[%s3431_s5 + $0xe0] sm:$0xff]  ;;  %v972_v26 = vsel %vm346_vm0, %v897_v53, 0  ;;  %v3087_v30 = vpack.c.bf16 %v1110_v52, %v1107_v51  ;;  %v915_v51 = vld [vmem:[%s3431_s5 + $0xf8] sm:$0xff]  ;;  %v1023_v52 = vsel %vm346_vm0, %v914_v50, 0  ;;  %v1258_v50 = vand.u32 4294901760, %v2900_v11 }
 0x1f9   : > { %v2435_v40 = vpack.c.bf16 %v3029_v38, %v3027_v36  ;;  %2372 = vmatpush3.bf16.xpose.msra.mxu0 %v3059_v2  ;;  %v1017_v18 = vsel %vm346_vm0, %v912_v16, 0  ;;  %v1068_v28 = vand.u32 4294901760, %v972_v26  ;;  %v1026_v54 = vsel %vm346_vm0, %v915_v51, 0 }
 0x1fa   : > { %v1113_v21 = vand.u32 4294901760, %v1017_v18  ;;  %2374 = vmatprep.subr.bf16.mxu0 %v3087_v30  ;;  %v1119_v61 = vand.u32 4294901760, %v1023_v52  ;;  %v978_v16 = vsel %vm346_vm0, %v899_v60, 0 }
 0x1fb   : > { %2436 = vmatpush3.bf16.xpose.msra.mxu1 %v2435_v40  ;;  %v3091_v40 = vsub.f32 %v1020_v19, %v1116_v22  ;;  %v3097_v47 = vsub.f32 %v972_v26, %v1068_v28  ;;  %v1074_v20 = vand.u32 4294901760, %v978_v16 }
 0x1fc   : > { %2438 = vmatprep.subr.bf16.mxu1 %v2437_v7  ;;  %v3089_v39 = vsub.f32 %v1017_v18, %v1113_v21  ;;  %v1122_v7 = vand.u32 4294901760, %v1026_v54  ;;  %v3121_v17 = vpack.c.bf16 %v1116_v22, %v1113_v21  ;;  %v3123_v18 = vpack.c.bf16 %v1068_v28, %v1065_v27 }
 0x1fd   : > { %v2443_v49 = vpack.c.bf16 %v3097_v47, %v3095_v46  ;;  %v3125_v53 = vsub.f32 %v1023_v52, %v1119_v61  ;;  %v1251_v28 = vand.u32 4294901760, %v2898_v10  ;;  %v1259_v52 = vsub.f32 %v2900_v11, %v1258_v50 }
 0x1fe   : > { %v2441_v48 = vpack.c.bf16 %v3091_v40, %v3089_v39  ;;  %3465 = vst [vmem:[#allocation8_spill] sm:$0xff] %v3121_v17  ;;  %v3127_v23 = vsub.f32 %v1026_v54, %v1122_v7  ;;  %v3129_v26 = vpack.c.bf16 %v1122_v7, %v1119_v61 }
 0x1ff   : > { %v1252_v51 = vsub.f32 %v2898_v10, %v1251_v28  ;;  %v3150_v61 = vpack.c.bf16 %v1258_v50, %v1251_v28  ;;  %v2010_v10 = vld [vmem:[%s3430_s4] ss:$0 sm:$0xff]  ;;  %v3436_v28 = vand.u32 4294901760, %v2902_v12  ;;  %v3434_v50 = vand.u32 4294901760, %v2906_v14 }
 0x200   : > { %v2445_v21 = vpack.c.bf16 %v3127_v23, %v3125_v53 }
 0x201   : > { %2376 = vmatpush3.bf16.xpose.msra.mxu0 %v3093_v43  ;;  %v1253_v54 = vand.u32 4294901760, %v1252_v51  ;;  %v3435_v51 = vand.u32 4294901760, %v2923_v24 }
 0x202   : > { %2378 = vmatprep.subr.bf16.mxu0 %v3121_v17 }
 0x203   : > { %2440 = vmatpush3.bf16.xpose.msra.mxu1 %v2439_v9  ;;  %v975_v9 = vsel %vm346_vm0, %v898_v55, 0  ;;  %v1260_v55 = vand.u32 4294901760, %v1259_v52  ;;  %v3437_v52 = vand.u32 4294901760, %v2925_v25 }
 0x204   : > { %2442 = vmatprep.subr.bf16.mxu1 %v2441_v48  ;;  %v1071_v19 = vand.u32 4294901760, %v975_v9 }
 0x205   : > { %v2385_v60 = vpack.c.bf16 %v1260_v55, %v1253_v54 }
 0x206   : > { %v3132_v48 = vsub.f32 %v975_v9, %v1071_v19  ;;  %v3143_v27 = vpack.c.bf16 %v1074_v20, %v1071_v19 }
 0x209   : > { %2380 = vmatpush3.bf16.xpose.msra.mxu0 %v3123_v18 }
 0x20a   : > { %2382 = vmatprep.subr.bf16.mxu0 %v3129_v26 }
 0x20b   : > { %2444 = vmatpush3.bf16.xpose.msra.mxu1 %v2443_v49  ;;  %v3134_v49 = vsub.f32 %v978_v16, %v1074_v20  ;;  %v2009_v20 = vld [vmem:[%s3429_s3] ss:$0 sm:$0xff] }
 0x20c   : > { %2446 = vmatprep.subr.bf16.mxu1 %v2445_v21 }
 0x20d   : > { %v2447_v22 = vpack.c.bf16 %v3134_v49, %v3132_v48 }
 0x211   : > { %2384 = vmatpush3.bf16.xpose.msra.mxu0 %v3143_v27 }
 0x212   : > { %2386 = vmatprep.subr.bf16.mxu0 %v2385_v60 }
 0x213   : > { %2448 = vmatpush3.bf16.xpose.msra.mxu1 %v2447_v22 }
 0x214   : > { %2450 = vmatprep.subr.bf16.mxu1 %v2904_v13 }
 0x285   : > { %v861_v7 = vpop.xlane.xlu0 %860 }
 0x286   : > { %v862_v9 = vmul.f32 0.03125, %v861_v7  ;;  %v1147_v7 = vsub.f32 %v2906_v14, %v3434_v50 }
 0x288   : > { %v863_v16 = vadd.f32 1e-12, %v862_v9  ;;  %v1266_v9 = vsub.f32 %v2923_v24, %v3435_v51  ;;  %v3440_v51 = vand.u32 4294901760, %v2954_v42 }
 0x28a   : > { %2628 = vrsqrt.f32 %v863_v16  ;;  %v1273_v16 = vsub.f32 %v2925_v25, %v3437_v52 }
 0x28c   : > { %v1274_v50 = vand.u32 4294901760, %v1273_v16 }
 0x294   : > { %v2629_v19 = vpop.eup %2628 }
 0x295   : > { %v865_v21 = vmul.f32 %v2629_v19, %v2998_v8  ;;  %v1140_v8 = vsub.f32 %v2902_v12, %v3436_v28  ;;  %v1280_v28 = vsub.f32 %v2954_v42, %v3440_v51  ;;  %v3444_v51 = vand.u32 4294901760, %v2978_v58 }
 0x297   : > { %v873_v11 = vmul.f32 %v2009_v20, %v865_v21  ;;  %v1141_v20 = vand.u32 4294901760, %v1140_v8 }
 0x299   : > { %v881_v22 = vadd.f32 %v2010_v10, %v873_v11  ;;  %v1148_v10 = vand.u32 4294901760, %v1147_v7  ;;  %v3441_v11 = vand.u32 4294901760, %v2941_v33 }
 0x29b   : > { %882 = vst.msk [vmem:[#allocation2] sm:$0xff] %vm346_vm0, %v881_v22  ;;  %v3439_v22 = vand.u32 4294901760, %v2947_v37  ;;  %v2387_v7 = vpack.c.bf16 %v1148_v10, %v1141_v20  ;;  %v1154_v52 = vsub.f32 %v2941_v33, %v3441_v11  ;;  %v3446_v11 = vand.u32 4294901760, %v2980_v59 }
 0x29d   : > { %v1155_v20 = vand.u32 4294901760, %v1154_v52 }
 0x2a2   : > { %v883_v54 = vld [vmem:[#allocation2] sm:$0xff] }
 0x2a3   : > { %v930_v55 = vsel %vm346_vm0, %v883_v54, 0  ;;  %v1267_v54 = vand.u32 4294901760, %v1266_v9  ;;  %v1161_v9 = vsub.f32 %v2947_v37, %v3439_v22  ;;  %v3447_v22 = vand.u32 4294901760, %v2976_v57 }
 0x2a4   : > { %v3168_v60 = vand.u32 4294901760, %v930_v55 }
 0x2a5   : > { %v2389_v16 = vpack.c.bf16 %v1274_v50, %v1267_v54  ;;  %v1162_v10 = vand.u32 4294901760, %v1161_v9  ;;  %v1281_v50 = vand.u32 4294901760, %v1280_v28  ;;  %v1294_v28 = vsub.f32 %v2978_v58, %v3444_v51 }
 0x2a6   : > { %v1126_v19 = vsub.f32 %v930_v55, %v3168_v60  ;;  %v1301_v9 = vsub.f32 %v2980_v59, %v3446_v11 }
 0x2a8   : > { %2147 = vmatprep.mubr.f32.mxu1 %v1126_v19  ;;  %v3180_v21 = vand.u32 4294901760, %v1126_v19 }
 0x2a9   : > { %2148 = vmatmul.mubr.f32.vlgmr.msra.gmra.mrb[0].mxu1 %v1126_v19 }
 0x2aa   : > { %2452 = vmatpush3.bf16.xpose.msra.mxu1 %v2908_v15  ;;  %2181 = vmatprep.mubr.f32.mxu1 %v3180_v21  ;;  %v1128_v55 = vsub.f32 %v1126_v19, %v3180_v21  ;;  %v3466_v15 = vand.u32 4294901760, %v2957_v44 }
 0x2ab   : > { %2454 = vmatprep.subr.bf16.mxu1 %v2933_v29 }
 0x2ac   : > { %v1129_v8 = vand.u32 4294901760, %v1128_v55  ;;  %v1287_v19 = vsub.f32 %v2957_v44, %v3466_v15  ;;  %v3442_v55 = vand.u32 4294901760, %v2974_v56  ;;  %v2391_v15 = vpack.c.bf16 %v1162_v10, %v1155_v20 }
 0x2ad   : > { %v3445_v20 = vand.u32 4294901760, %v2991_v3  ;;  %v3451_v10 = vand.u32 4294901760, %v2993_v4 }
 0x2ae   : > { %2079 = vmatprep.mubr.f32.mxu0 %v1129_v8  ;;  %v1288_v54 = vand.u32 4294901760, %v1287_v19  ;;  %v1168_v52 = vsub.f32 %v2974_v56, %v3442_v55  ;;  %v1295_v55 = vand.u32 4294901760, %v1294_v28 }
 0x2af   : > { %2080 = vmatmul.mubr.f32.vlgmr.msra.gmra.mrb[2].mxu0 %v1129_v8  ;;  %v1175_v8 = vsub.f32 %v2976_v57, %v3447_v22 }
 0x2b0   : > { %2388 = vmatpush3.bf16.xpose.msra.mxu0 %v2387_v7  ;;  %2113 = vmatprep.mubr.f32.mxu0 %v3168_v60  ;;  %v2393_v7 = vpack.c.bf16 %v1288_v54, %v1281_v50  ;;  %v3448_v50 = vand.u32 4294901760, %v3021_v32  ;;  %v3450_v54 = vand.u32 4294901760, %v3023_v34 }
 0x2b1   : > { %2390 = vmatprep.subr.bf16.mxu0 %v2389_v16  ;;  %v1169_v16 = vand.u32 4294901760, %v1168_v52  ;;  %v1176_v19 = vand.u32 4294901760, %v1175_v8  ;;  %v1189_v52 = vsub.f32 %v2993_v4, %v3451_v10 }
 0x2b2   : > { %2456 = vmatpush3.bf16.xpose.msra.mxu1 %v2952_v41  ;;  %v1315_v28 = vsub.f32 %v3023_v34, %v3450_v54 }
 0x2b3   : > { %2458 = vmatprep.subr.bf16.mxu1 %v2959_v45  ;;  %v1302_v45 = vand.u32 4294901760, %v1301_v9  ;;  %v2395_v51 = vpack.c.bf16 %v1176_v19, %v1169_v16  ;;  %v1190_v16 = vand.u32 4294901760, %v1189_v52  ;;  %v3449_v19 = vand.u32 4294901760, %v3027_v36 }
 0x2b4   : > { %v1316_v22 = vand.u32 4294901760, %v1315_v28 }
 0x2b5   : > { %v2397_v8 = vpack.c.bf16 %v1302_v45, %v1295_v55  ;;  %v3452_v45 = vand.u32 4294901760, %v3055_v0  ;;  %v3454_v55 = vand.u32 4294901760, %v3057_v1 }
 0x2b8   : > { %2392 = vmatpush3.bf16.xpose.msra.mxu0 %v2391_v15  ;;  %v1182_v15 = vsub.f32 %v2991_v3, %v3445_v20  ;;  %v3455_v20 = vand.u32 4294901760, %v3029_v38 }
 0x2b9   : > { %2394 = vmatprep.subr.bf16.mxu0 %v2393_v7  ;;  %v1308_v7 = vsub.f32 %v3021_v32, %v3448_v50 }
 0x2ba   : > { %2460 = vmatpush3.bf16.xpose.msra.mxu1 %v2984_v62  ;;  %v1183_v9 = vand.u32 4294901760, %v1182_v15  ;;  %v1203_v15 = vsub.f32 %v3029_v38, %v3455_v20 }
 0x2bb   : > { %2462 = vmatprep.subr.bf16.mxu1 %v3019_v31  ;;  %v1309_v11 = vand.u32 4294901760, %v1308_v7  ;;  %v1329_v7 = vsub.f32 %v3057_v1, %v3454_v55 }
 0x2bc   : > { %v2399_v50 = vpack.c.bf16 %v1190_v16, %v1183_v9  ;;  %v1204_v9 = vand.u32 4294901760, %v1203_v15  ;;  %v3453_v16 = vand.u32 4294901760, %v3061_v5 }
 0x2bd   : > { %v2401_v52 = vpack.c.bf16 %v1316_v22, %v1309_v11  ;;  %v1330_v10 = vand.u32 4294901760, %v1329_v7  ;;  %v3456_v11 = vand.u32 4294901760, %v3089_v39  ;;  %v3457_v22 = vand.u32 4294901760, %v3091_v40 }
 0x2c0   : > { %2396 = vmatpush3.bf16.xpose.msra.mxu0 %v2395_v51  ;;  %v1196_v51 = vsub.f32 %v3027_v36, %v3449_v19  ;;  %v3458_v19 = vand.u32 4294901760, %v3063_v6 }
 0x2c1   : > { %2398 = vmatprep.subr.bf16.mxu0 %v2397_v8  ;;  %v1322_v8 = vsub.f32 %v3055_v0, %v3452_v45 }
 0x2c2   : > { %2464 = vmatpush3.bf16.xpose.msra.mxu1 %v3025_v35  ;;  %v1197_v28 = vand.u32 4294901760, %v1196_v51  ;;  %v1217_v51 = vsub.f32 %v3063_v6, %v3458_v19  ;;  %v1237_v19 = vand.u32 4294901760, %v3132_v48 }
 0x2c3   : > { %2466 = vmatprep.subr.bf16.mxu1 %v3053_v63  ;;  %v1323_v54 = vand.u32 4294901760, %v1322_v8  ;;  %v1343_v8 = vsub.f32 %v3091_v40, %v3457_v22 }
 0x2c4   : > { %v2403_v45 = vpack.c.bf16 %v1204_v9, %v1197_v28  ;;  %v1218_v28 = vand.u32 4294901760, %v1217_v51  ;;  %v1223_v9 = vand.u32 4294901760, %v3095_v46 }
 0x2c5   : > { %v2405_v15 = vpack.c.bf16 %v1330_v10, %v1323_v54  ;;  %v1344_v20 = vand.u32 4294901760, %v1343_v8  ;;  %v1349_v10 = vand.u32 4294901760, %v3125_v53  ;;  %v1356_v54 = vand.u32 4294901760, %v3127_v23 }
 0x2c8   : > { %2400 = vmatpush3.bf16.xpose.msra.mxu0 %v2399_v50  ;;  %v1210_v50 = vsub.f32 %v3061_v5, %v3453_v16  ;;  %v3460_v16 = vand.u32 4294901760, %v3097_v47 }
 0x2c9   : > { %2402 = vmatprep.subr.bf16.mxu0 %v2401_v52  ;;  %v1336_v52 = vsub.f32 %v3089_v39, %v3456_v11 }
 0x2ca   : > { %2468 = vmatpush3.bf16.xpose.msra.mxu1 %v3059_v2  ;;  %v1211_v7 = vand.u32 4294901760, %v1210_v50  ;;  %v1231_v50 = vsub.f32 %v3097_v47, %v3460_v16 }
 0x2cb   : > { %2470 = vmatprep.subr.bf16.mxu1 %v3087_v30  ;;  %v1337_v55 = vand.u32 4294901760, %v1336_v52  ;;  %v1357_v52 = vsub.f32 %v3127_v23, %v1356_v54 }
 0x2cc   : > { %v2407_v11 = vpack.c.bf16 %v1218_v28, %v1211_v7  ;;  %v1232_v22 = vand.u32 4294901760, %v1231_v50  ;;  %v1244_v7 = vand.u32 4294901760, %v3134_v49  ;;  %v3467_v50 = vand.u32 4294901760, %v2902_v12 }
 0x2cd   : > { %v2409_v51 = vpack.c.bf16 %v1344_v20, %v1337_v55  ;;  %v1238_v20 = vsub.f32 %v3132_v48, %v1237_v19  ;;  %v3470_v48 = vand.u32 4294901760, %v2925_v25 }
 0x2cf   : > { %v1239_v55 = vand.u32 4294901760, %v1238_v20  ;;  %v3481_v20 = vand.u32 4294901760, %v3021_v32  ;;  %v3488_v32 = vand.u32 4294901760, %v3063_v6  ;;  %v3493_v6 = vld [vmem:[#allocation7_spill] sm:$0xff] }
 0x2d0   : > { %2404 = vmatpush3.bf16.xpose.msra.mxu0 %v2403_v45  ;;  %v1224_v45 = vsub.f32 %v3095_v46, %v1223_v9 }
 0x2d1   : > { %2406 = vmatprep.subr.bf16.mxu0 %v2405_v15  ;;  %v1350_v15 = vsub.f32 %v3125_v53, %v1349_v10  ;;  %v1245_v53 = vsub.f32 %v3134_v49, %v1244_v7 }
 0x2d2   : > { %2472 = vmatpush3.bf16.xpose.msra.mxu1 %v3093_v43  ;;  %v1225_v8 = vand.u32 4294901760, %v1224_v45 }
 0x2d3   : > { %2474 = vmatprep.subr.bf16.mxu1 %v3121_v17  ;;  %v1351_v28 = vand.u32 4294901760, %v1350_v15  ;;  %v1358_v17 = vand.u32 4294901760, %v1357_v52 }
 0x2d4   : > { %v2411_v16 = vpack.c.bf16 %v1232_v22, %v1225_v8  ;;  %v3469_v22 = vand.u32 4294901760, %v2923_v24  ;;  %v3474_v24 = vand.u32 4294901760, %v2957_v44  ;;  %v3477_v8 = vand.u32 4294901760, %v2978_v58 }
 0x2d5   : > { %v2413_v23 = vpack.c.bf16 %v1358_v17, %v1351_v28  ;;  %v3471_v17 = vand.u32 4294901760, %v2941_v33  ;;  %v3478_v33 = vand.u32 4294901760, %v2980_v59  ;;  %v3479_v28 = vand.u32 4294901760, %v2991_v3 }
 0x2d6   : > { %v2485_v49 = vpack.c.bf16 %v3470_v48, %v3469_v22  ;;  %v3484_v58 = vand.u32 4294901760, %v3029_v38  ;;  %v3491_v38 = vand.u32 4294901760, %v3097_v47 }
 0x2d8   : > { %2408 = vmatpush3.bf16.xpose.msra.mxu0 %v2407_v11  ;;  %v1246_v11 = vand.u32 4294901760, %v1245_v53  ;;  %v3482_v53 = vand.u32 4294901760, %v3023_v34 }
 0x2d9   : > { %2410 = vmatprep.subr.bf16.mxu0 %v2409_v51  ;;  %v3468_v51 = vand.u32 4294901760, %v2906_v14  ;;  %v3473_v14 = vand.u32 4294901760, %v2954_v42  ;;  %v3480_v42 = vand.u32 4294901760, %v2993_v4  ;;  %v3487_v4 = vand.u32 4294901760, %v3061_v5  ;;  %v3492_v5 = vld [vmem:[#allocation6_spill] sm:$0xff] }
 0x2da   : > { %2476 = vmatpush3.bf16.xpose.msra.mxu1 %v3123_v18  ;;  %v2415_v45 = vpack.c.bf16 %v1246_v11, %v1239_v55  ;;  %v3486_v55 = vand.u32 4294901760, %v3057_v1  ;;  %v3489_v11 = vand.u32 4294901760, %v3089_v39  ;;  %v2509_v1 = vpack.c.bf16 %v1356_v54, %v1349_v10 }
 0x2db   : > { %2478 = vmatprep.subr.bf16.mxu1 %v3129_v26  ;;  %v2483_v15 = vpack.c.bf16 %v3468_v51, %v3467_v50  ;;  %v2489_v25 = vpack.c.bf16 %v3474_v24, %v3473_v14  ;;  %v2495_v44 = vpack.c.bf16 %v3480_v42, %v3479_v28  ;;  %v2503_v34 = vpack.c.bf16 %v3488_v32, %v3487_v4 }
 0x2dc   : > { %v2511_v50 = vpack.c.bf16 %v1244_v7, %v1237_v19 }
 0x2e0   : > { %2412 = vmatpush3.bf16.xpose.msra.mxu0 %v2411_v16  ;;  %v3476_v16 = vand.u32 4294901760, %v2976_v57  ;;  %v3483_v57 = vand.u32 4294901760, %v3027_v36 }
 0x2e1   : > { %2414 = vmatprep.subr.bf16.mxu0 %v2413_v23  ;;  %v3485_v23 = vand.u32 4294901760, %v3055_v0  ;;  %v2507_v0 = vpack.c.bf16 %v3491_v38, %v1223_v9 }
 0x2e2   : > { %2480 = vmatpush3.bf16.xpose.msra.mxu1 %v3143_v27  ;;  %v2499_v59 = vpack.c.bf16 %v3484_v58, %v3483_v57 }
 0x2e3   : > { %2482 = vmatprep.subr.bf16.mxu1 %v3150_v61  ;;  %v3472_v61 = vand.u32 4294901760, %v2947_v37  ;;  %v2493_v37 = vpack.c.bf16 %v3478_v33, %v3477_v8  ;;  %v2501_v3 = vpack.c.bf16 %v3486_v55, %v3485_v23 }
 0x2e5   : > { %v2487_v12 = vpack.c.bf16 %v3472_v61, %v3471_v17 }
 0x2e8   : > { %2416 = vmatpush3.bf16.xpose.msra.mxu0 %v2415_v45  ;;  %v3490_v45 = vand.u32 4294901760, %v3091_v40 }
 0x2e9   : > { %2182 = vmatmul.mubr.f32.vlgmr.msra.gmra.mrb[0].mxu1 %v3180_v21  ;;  %v3475_v21 = vand.u32 4294901760, %v2974_v56  ;;  %v2497_v56 = vpack.c.bf16 %v3482_v53, %v3481_v20 }
 0x2ea   : > { %2484 = vmatpush3.bf16.xpose.msra.mxu1 %v2483_v15  ;;  %2215 = vmatprep.mubr.f32.mxu1 %v3168_v60  ;;  %v2505_v36 = vpack.c.bf16 %v3490_v45, %v3489_v11 }
 0x2eb   : > { %2486 = vmatprep.subr.bf16.mxu1 %v2485_v49  ;;  %v2491_v52 = vpack.c.bf16 %v3476_v16, %v3475_v21 }
 0x2ef   : > { %2114 = vmatmul.mubr.f32.vlgmr.msra.gmra.mrb[2].mxu0 %v3168_v60 }
 0x2f2   : > { %2488 = vmatpush3.bf16.xpose.msra.mxu1 %v2487_v12 }
 0x2f3   : > { %2490 = vmatprep.subr.bf16.mxu1 %v2489_v25 }
 0x2fa   : > { %2492 = vmatpush3.bf16.xpose.msra.mxu1 %v2491_v52 }
 0x2fb   : > { %2494 = vmatprep.subr.bf16.mxu1 %v2493_v37 }
 0x302   : > { %2496 = vmatpush3.bf16.xpose.msra.mxu1 %v2495_v44 }
 0x303   : > { %2498 = vmatprep.subr.bf16.mxu1 %v2497_v56 }
 0x30a   : > { %2500 = vmatpush3.bf16.xpose.msra.mxu1 %v2499_v59 }
 0x30b   : > { %2502 = vmatprep.subr.bf16.mxu1 %v2501_v3 }
 0x312   : > { %2504 = vmatpush3.bf16.xpose.msra.mxu1 %v2503_v34 }
 0x313   : > { %2506 = vmatprep.subr.bf16.mxu1 %v2505_v36 }
 0x31a   : > { %2508 = vmatpush3.bf16.xpose.msra.mxu1 %v2507_v0 }
 0x31b   : > { %2510 = vmatprep.subr.bf16.mxu1 %v2509_v1 }
 0x322   : > { %2512 = vmatpush3.bf16.xpose.msra.mxu1 %v2511_v50 }
 0x323   : > { %2514 = vmatprep.subr.bf16.mxu1 %v2904_v13  ;;  %v3494_v13 = vld [vmem:[#allocation8_spill] sm:$0xff] }
 0x329   : > { %2216 = vmatmul.mubr.f32.vlgmr.msra.gmra.mrb[0].mxu1 %v3168_v60 }
 0x32a   : > { %2516 = vmatpush3.bf16.xpose.msra.mxu1 %v3492_v5  ;;  %2249 = vmatprep.mubr.f32.mxu1 %v3168_v60 }
 0x32b   : > { %2518 = vmatprep.subr.bf16.mxu1 %v2933_v29 }
 0x332   : > { %2520 = vmatpush3.bf16.xpose.msra.mxu1 %v2952_v41 }
 0x333   : > { %2522 = vmatprep.subr.bf16.mxu1 %v3493_v6 }
 0x33a   : > { %2524 = vmatpush3.bf16.xpose.msra.mxu1 %v2984_v62  ;;  %v918_v62 = vlaneseq }
 0x33b   : > { %2526 = vmatprep.subr.bf16.mxu1 %v3019_v31 }
 0x33c   : > { %v919_v31 = vshrl.u32 %v918_v62, 7 }
 0x342   : > { %2528 = vmatpush3.bf16.xpose.msra.mxu1 %v3025_v35  ;;  %v920_v35 = vsub.s32 0, %v919_v31 }
 0x343   : > { %2530 = vmatprep.subr.bf16.mxu1 %v3053_v63  ;;  %v916_v63 = vld [vmem:[%s3432_s6] sm:$0x3] }
 0x34a   : > { %2532 = vmatpush3.bf16.xpose.msra.mxu1 %v3059_v2  ;;  %v924_v2 = vsub.s32 1, %v919_v31 }
 0x34b   : > { %2534 = vmatprep.subr.bf16.mxu1 %v3087_v30  ;;  %v921_v30 = vrot.slane %v916_v63, %v920_v35 }
 0x34c   : > { %v925_v39 = vrot.slane %v916_v63, %v924_v2 }
 0x352   : > { %2536 = vmatpush3.bf16.xpose.msra.mxu1 %v3093_v43 }
 0x353   : > { %2538 = vmatprep.subr.bf16.mxu1 %v3494_v13 }
 0x35a   : > { %2540 = vmatpush3.bf16.xpose.msra.mxu1 %v3123_v18 }
 0x35b   : > { %2542 = vmatprep.subr.bf16.mxu1 %v3129_v26 }
 0x362   : > { %2544 = vmatpush3.bf16.xpose.msra.mxu1 %v3143_v27 }
 0x369   : > { %2250 = vmatmul.mubr.f32.vlgmr.msra.gmra.mrb[0].mxu1 %v3168_v60 }
 0x3c2   : > { %v1363_v29 = vpop.f32.mrb[2].mxu0 }
 0x3c3   : > { %v1365_v41 = vpop.f32.mrb[3].mxu0  ;;  %v2546_v40 = vadd.f32 %v1363_v29, %v921_v30 }
 0x3c4   : > { %v2548_v43 = vadd.f32 %v1365_v41, %v925_v39 }
 0x43c   : > { %v1878_v46 = vpop.f32.mrb[0].mxu1 }
 0x43d   : > { %v2547_v47 = vadd.f32 %v2546_v40, %v1878_v46  ;;  %v1880_v18 = vpop.f32.mrb[1].mxu1 }
 0x43e   : > { %v2549_v26 = vadd.f32 %v2548_v43, %v1880_v18 }
 0x43f   : > { %1883 = vst [vmem:[%s313_s8] sm:$0xff] %v2547_v47 }
 0x440   : > { %1884 = vst [vmem:[%s313_s8 + $0x8] sm:$0xff] %v2549_v26 }
 0x441   : > { %2643 = shalt.err (!%p2640_p5)
}
 0x442   : > { %s2644_s20 = scalar_lea.hbm %s3379_s16, 256  ;;  %s2648_s30 = scalar_lea.hbm %s3433_s7, 512 }
 0x443   : > { %p2645_p6 = scmp.ne.s32.totalorder %s3379_s16, %s2644_s20  ;;  %p2649_p10 = scmp.lt.u32.totalorder %s3379_s16, %s3433_s7 }
 0x444   : > { %p2650_p11 = scmp.lt.u32.totalorder %s2648_s30, %s2644_s20  ;;  %p2652_p13 = scmp.lt.u32.totalorder %s2644_s20, %s3379_s16 }
 0x445   : > { %p2646_p7 = pnand %p2645_p6, %p2794_p4 }
 0x446   : > { %p2651_p12 = por %p2650_p11, %p2649_p10 }
 0x447   : > { %p2647_p9 = pneg %p2646_p7 }
 0x448   : > { %p2653_p0 = por %p2652_p13, %p2651_p12 }
 0x44a   : > { %p2654_p1 = pnand %p2653_p0, %p2647_p9 }
 0x44c   : > { %2657 = shalt.err (!%p2654_p1)
}
 0x44d   : > { %2568 = dma.vmem_to_hbm [thread:$0]  (%p2794_p4), %s3381_s10, 256, %s3379_s16, %s1886_s27  }
 0x44e PF: > { %p2574_p2 = scmp.ge.s32.totalorder %s2708_s29, 2  ;;  %s1914_s15 = sand.u32 1, %s2688_s24  }
 0x44f   : > { %s1915_s17 = scalar_lea.sflag [#allocation4], %s1914_s15 }
 0x450   : > { %p2571_p3 = pnand %p2574_p2, %p2801_p8 }
 0x452   : > { %2683 = dma.done.wait (!%p2571_p3), %s1915_s17, 256  }
 0x453   : > { %2685 = vsyncadd (!%p2571_p3), %s1915_s17, 4294967040  ;;  %s20_s29 = sadd.s32 1, %s2708_s29   ;;  %s3495_s24 = smov %s2692_s25 }
 0x454   : > { %p17_p5 = scmp.ge.s32.totalorder %s20_s29, 4   ;;  %s3496_s25 = smov %s2696_s26 }
 0x455   : > { %s3497_s26 = smov %s2807_s14  ;;  %s3498_s27 = smov %s2704_s28 }
 0x456   : > { %s3499_s28 = smov %s3501_s9  ;;  %19 = sbr.rel (!%p17_p5) target bundleno = 4 (0x4), region = 93 }
 0x45d   :  { %1920 = vsyncpa [#allocation4], 1 }
 0x45e   :  { %1922 = vsyncpa [#allocation4 + $0x1], 1 }

// kernel: tpu_custom_call.1
= control target key start
LH: loop header
LB: loop body
LE: loop exit
PB: predicated region body
PF: predicated region fallthrough
CT: control target
= control target key end

     0   :  { %12 = vsyncpa [#allocation4], 0  ;;  %s3426_s0 = inlined_call_operand.vmem [shape: f32[16,32], index: 0, kind: input, shape index: {}]   ;;  %s3427_s1 = inlined_call_operand.vmem [shape: f32[32,32], index: 1, kind: input, shape index: {}]   ;;  %s3428_s2 = inlined_call_operand.vmem [shape: f32[1,32], index: 2, kind: input, shape index: {}]   ;;  %s3429_s3 = inlined_call_operand.vmem [shape: f32[1,32], index: 3, kind: input, shape index: {}]   ;;  %s3430_s4 = inlined_call_operand.vmem [shape: f32[1,32], index: 4, kind: input, shape index: {}]   ;;  %s3431_s5 = inlined_call_operand.vmem [shape: f32[256,32], index: 5, kind: input, shape index: {}]   ;;  %s3432_s6 = inlined_call_operand.vmem [shape: f32[1,256], index: 6, kind: input, shape index: {}]   ;;  %s3433_s7 = inlined_call_operand.hbm [shape: f32[16,256], index: 7, kind: output, shape index: {}]  }
   0x1   :  { %14 = vsyncpa [#allocation4 + $0x1], 0  ;;  %s2754_s24 = smov 0   ;;  %s2756_s25 = smov 0  }
   0x2   :  { %s2758_s26 = smov 0   ;;  %s2760_s27 = smov 0  }
   0x3   :  { %s2762_s28 = smov 0   ;;  %s2764_s29 = smov 0  }
   0x4 LB: > { %s1999_s30 = sadd.s32 4294967295, %s2708_s29   ;;  %s2000_s8 = sadd.s32 4294967294, %s2708_s29   ;;  %s2708_s29 = sphi %s2764_s29, %s20_s29   ;;  %s2704_s28 = sphi %s2762_s28, %s3499_s28   ;;  %s2700_s27 = sphi %s2760_s27, %s3498_s27   ;;  %s2696_s26 = sphi %s2758_s26, %s3497_s26   ;;  %s2692_s25 = sphi %s2756_s25, %s3496_s25   ;;  %s2688_s24 = sphi %s2754_s24, %s3495_s24  }
   0x5   : > { %s32_s9 = sadd.s32 1, %s2704_s28  ;;  %s203_s10 = sadd.s32 1, %s2696_s26 }
   0x6   : > { %p34_p0 = scmp.ge.s32.totalorder %s32_s9, 2  ;;  %p213_p1 = scmp.ne.s32.totalorder %s2696_s26, %s2692_s25 }
   0x7   : > { %p214_p2 = scmp.eq.s32.totalorder %s1999_s30, 1  ;;  %p219_p3 = scmp.ne.s32.totalorder %s2692_s25, %s2688_s24 }
   0x8   : > { %s3501_s9 = smov (%p34_p0, %s32_s9), 0  ;;  %p220_p5 = scmp.eq.s32.totalorder %s2000_s8, 1 }
   0x9   : > { %p2794_p4 = por %p214_p2, %p213_p1  ;;  %s198_s12 = ssub.s32 %s2704_s28, %s3501_s9 }
   0xa   : > { %p2005_p6 = scmp.ge.s32.totalorder %s2708_s29, 1  ;;  %p201_p7 = scmp.eq.s32.totalorder %s198_s12, 0 }
   0xb   : > { %p2801_p8 = por %p220_p5, %p219_p3  ;;  %p274_p9 = scmp.lt.s32.totalorder %s2708_s29, 3 }
   0xc   : > { %s2807_s14 = scalar_select %p201_p7, %s2696_s26, %s203_s10  }
   0xd   : > { %p275_p10 = pnand %p2005_p6, %p274_p9 }
   0xf   : > { %278 = sbr.rel (%p275_p10) target bundleno = 1102 (0x44e), region = 48 }
  0x16   : > { %v335_v0 = vld [vmem:[%s3427_s1] sm:$0xff]  ;;  %v336_v1 = vld [vmem:[%s3427_s1 + $0x8] sm:$0xff]  ;;  %vm346_vm0 = vcmask 261120   ;;  %v337_v2 = vld [vmem:[%s3427_s1 + $0x10] sm:$0xff]  ;;  %v2710_v3 = vmov 0.0|0.0   ;;  %p314_p11 = scmp.lt.s32.totalorder %s2700_s27, 1 }
  0x17   : > { %2317 = vmatprep.subr.bf16.mxu0 %v2710_v3  ;;  %v351_v4 = vsel %vm346_vm0, %v335_v0, 0  ;;  %v354_v5 = vsel %vm346_vm0, %v336_v1, 0  ;;  %v338_v6 = vld [vmem:[%s3427_s1 + $0x18] sm:$0xff]  ;;  %vm2711_vm1 = vmmov 0   ;;  %v2712_v9 = vmov 0.0   ;;  %v900_v55 = vld [vmem:[%s3431_s5 + $0x80] sm:$0xff] }
  0x18   : > { %v363_v7 = vand.u32 4294901760, %v351_v4  ;;  %v366_v8 = vand.u32 4294901760, %v354_v5  ;;  %2259 = vmatprep.mubr.msk.f32.mxu0 %vm2711_vm1, %v2712_v9  ;;  %v357_v10 = vsel %vm346_vm0, %v337_v2, 0  ;;  %v360_v11 = vsel %vm346_vm0, %v338_v6, 0  ;;  %s315_s23 = scalar_select %p314_p11, %s2700_s27, 1  ;;  %v901_v56 = vld [vmem:[%s3431_s5 + $0x88] sm:$0xff] }
  0x19   : > { %v369_v15 = vand.u32 4294901760, %v357_v10  ;;  %v372_v16 = vand.u32 4294901760, %v360_v11  ;;  %v2008_v45 = vld [vmem:[%s3428_s2] ss:$0 sm:$0xff]  ;;  %v981_v58 = vsel %vm346_vm0, %v900_v55, 0  ;;  %v984_v59 = vsel %vm346_vm0, %v901_v56, 0 }
  0x1a   : > { %v2830_v12 = vpack.c.bf16 %v366_v8, %v363_v7  ;;  %v443_v13 = vsub.f32 %v351_v4, %v363_v7  ;;  %v450_v14 = vsub.f32 %v354_v5, %v366_v8  ;;  %s2007_s30 = sshll.u32 %s315_s23, 3  ;;  %v884_v57 = vld [vmem:[%s3431_s5] sm:$0xff]  ;;  %v885_v60 = vld [vmem:[%s3431_s5 + $0x8] sm:$0xff]  ;;  %v902_v62 = vld [vmem:[%s3431_s5 + $0x90] sm:$0xff]  ;;  %v1077_v0 = vand.u32 4294901760, %v981_v58  ;;  %s311_s20 = sand.u32 1, %s2692_s25  }
  0x1b   : > { %s317_s12 = scalar_lea.vmem %s3426_s0, %s2007_s30  ;;  %v457_v21 = vsub.f32 %v357_v10, %v369_v15  ;;  %v2321_v23 = vpack.c.bf16 %v372_v16, %v369_v15  ;;  %v464_v24 = vsub.f32 %v360_v11, %v372_v16  ;;  %v933_v61 = vsel %vm346_vm0, %v884_v57, 0  ;;  %v903_v63 = vld [vmem:[%s3431_s5 + $0x98] sm:$0xff]  ;;  %v886_v4 = vld [vmem:[%s3431_s5 + $0x10] sm:$0xff]  ;;  %s2006_s23 = sshll.u32 %s311_s20, 4 }
  0x1c   : > { %2319 = vmatpush3.bf16.xpose.msra.mxu0 %v2830_v12  ;;  %v444_v17 = vand.u32 4294901760, %v443_v13  ;;  %v451_v18 = vand.u32 4294901760, %v450_v14  ;;  %v334_v19 = vld [vmem:[%s317_s12] sm:$0xff]  ;;  %v2330_v41 = vpack.c.bf16 %v450_v14, %v443_v13  ;;  %v1080_v1 = vand.u32 4294901760, %v984_v59  ;;  %v887_v8 = vld [vmem:[%s3431_s5 + $0x18] sm:$0xff]  ;;  %s2016_s30 = sshll.u32 %s2700_s27, 8 }
  0x1d   : > { %2320 = vmatprep.subr.bf16.mxu0 %v2710_v3  ;;  %v348_v20 = vsel %vm346_vm0, %v334_v19, 0  ;;  %v458_v31 = vand.u32 4294901760, %v457_v21  ;;  %v465_v32 = vand.u32 4294901760, %v464_v24  ;;  %v2333_v42 = vpack.c.bf16 %v464_v24, %v457_v21  ;;  %v891_v55 = vld [vmem:[%s3431_s5 + $0x38] sm:$0xff]  ;;  %s313_s8 = scalar_lea.vmem [#allocation3], %s2006_s23  ;;  %s3379_s16 = scalar_lea.hbm %s3433_s7, %s2016_s30 }
  0x1e   : > { %v431_v22 = vand.u32 4294901760, %v348_v20  ;;  %v445_v25 = vsub.f32 %v443_v13, %v444_v17  ;;  %v452_v26 = vsub.f32 %v450_v14, %v451_v18  ;;  %v2342_v43 = vpack.c.bf16 %v451_v18, %v444_v17  ;;  %v904_v18 = vld [vmem:[%s3431_s5 + $0xa0] sm:$0xff]  ;;  %s1902_s10 = sshll.u32 %s313_s8, 4  ;;  %s1886_s27 = scalar_lea.sflag [#allocation4], %s311_s20  ;;  %s3381_s10 = int_to_ptr.vmem [resolvable:$true] %s1902_s10 }
  0x1f   : > { %v459_v36 = vsub.f32 %v457_v21, %v458_v31  ;;  %v466_v37 = vsub.f32 %v464_v24, %v465_v32  ;;  %v2345_v44 = vpack.c.bf16 %v465_v32, %v458_v31  ;;  %v936_v2 = vsel %vm346_vm0, %v885_v60, 0  ;;  %v906_v31 = vld [vmem:[%s3431_s5 + $0xb0] sm:$0xff]  ;;  %s2630_s17 = scalar_lea.vmem %s3381_s10, 256  ;;  %s2713_s18 = smov [#allocation3]  }
  0x20   : > { %v432_v27 = vsub.f32 %v348_v20, %v431_v22  ;;  %v446_v29 = vand.u32 4294901760, %v445_v25  ;;  %v453_v30 = vand.u32 4294901760, %v452_v26  ;;  %v1032_v5 = vand.u32 4294901760, %v936_v2  ;;  %v888_v26 = vld [vmem:[%s3431_s5 + $0x20] sm:$0xff]  ;;  %p2631_p12 = scmp.ne.s32.totalorder %s3381_s10, %s2630_s17  ;;  %s2634_s19 = sshll.u32 %s2713_s18, 4  ;;  %s2635_s19 = int_to_ptr.vmem [resolvable:$false] %s2634_s19 }
  0x21   : > { %v460_v38 = vand.u32 4294901760, %v459_v36  ;;  %v467_v39 = vand.u32 4294901760, %v466_v37  ;;  %v987_v6 = vsel %vm346_vm0, %v902_v62, 0  ;;  %v990_v7 = vsel %vm346_vm0, %v903_v63, 0  ;;  %v907_v36 = vld [vmem:[%s3431_s5 + $0xb8] sm:$0xff]  ;;  %s2636_s21 = scalar_lea.vmem %s2635_s19, 512  ;;  %p2637_p1 = scmp.lt.s32.totalorder %s3381_s10, %s2635_s19 }
  0x22   : > { %v433_v28 = vand.u32 4294901760, %v432_v27  ;;  %v2324_v35 = vpack.c.bf16 %v453_v30, %v446_v29  ;;  %v2898_v10 = vsub.f32 %v981_v58, %v1077_v0  ;;  %v2900_v11 = vsub.f32 %v984_v59, %v1080_v1  ;;  %p2632_p13 = pnand %p2631_p12, %p2794_p4  ;;  %p2638_p2 = scmp.lt.s32.totalorder %s2636_s21, %s2630_s17 }
  0x23   : > { %v2327_v40 = vpack.c.bf16 %v467_v39, %v460_v38  ;;  %v2904_v13 = vpack.c.bf16 %v1080_v1, %v1077_v0  ;;  %v2906_v14 = vsub.f32 %v936_v2, %v1032_v5  ;;  %v1083_v16 = vand.u32 4294901760, %v987_v6 }
  0x24   : > { %2322 = vmatpush3.bf16.xpose.msra.mxu0 %v2321_v23  ;;  %v434_v33 = vsub.f32 %v432_v27, %v433_v28  ;;  %v1086_v17 = vand.u32 4294901760, %v990_v7  ;;  %v2417_v19 = vpack.c.bf16 %v2900_v11, %v2898_v10  ;;  %v942_v20 = vsel %vm346_vm0, %v887_v8, 0  ;;  %p2633_p0 = pneg %p2632_p13  ;;  %p2639_p3 = por %p2638_p2, %p2637_p1 }
  0x25   : > { %2323 = vmatprep.subr.bf16.mxu0 %v2710_v3  ;;  %v2923_v24 = vsub.f32 %v987_v6, %v1083_v16  ;;  %v993_v30 = vsel %vm346_vm0, %v904_v18, 0  ;;  %v945_v39 = vsel %vm346_vm0, %v888_v26, 0  ;;  %v909_v18 = vld [vmem:[%s3431_s5 + $0xc8] sm:$0xff] }
  0x26   : > { %v435_v34 = vand.u32 4294901760, %v434_v33  ;;  %v2925_v25 = vsub.f32 %v990_v7, %v1086_v17  ;;  %2418 = vmatprep.subr.bf16.mxu1 %v2417_v19  ;;  %v2933_v29 = vpack.c.bf16 %v1086_v17, %v1083_v16  ;;  %v908_v17 = vld [vmem:[%s3431_s5 + $0xc0] sm:$0xff]  ;;  %p2640_p5 = pnand %p2639_p3, %p2633_p0 }
  0x27   : > { %v1005_v19 = vsel %vm346_vm0, %v908_v17, 0  ;;  %v913_v17 = vld [vmem:[%s3431_s5 + $0xe8] sm:$0xff] }
  0x28   : > { %v2421_v32 = vpack.c.bf16 %v2925_v25, %v2923_v24 }
  0x2b   : > { %2260 = vmatmul.mubr.f32.vlgmr.msra.gmra.mrb[0].mxu0 %v435_v34 }
  0x2c   : > { %2325 = vmatpush3.bf16.xpose.msra.mxu0 %v2324_v35  ;;  %2270 = vmatprep.mubr.msk.f32.mxu0 %vm2711_vm1, %v2712_v9  ;;  %v1089_v35 = vand.u32 4294901760, %v993_v30 }
  0x2d   : > { %2326 = vmatprep.subr.bf16.mxu0 %v2710_v3 }
  0x34   : > { %2328 = vmatpush3.bf16.xpose.msra.mxu0 %v2327_v40 }
  0x35   : > { %2329 = vmatprep.subr.bf16.mxu0 %v2710_v3 }
  0x3b   : > { %2271 = vmatmul.mubr.f32.vlgmr.msra.gmra.mrb[0].mxu0 %v431_v22 }
  0x3c   : > { %2331 = vmatpush3.bf16.xpose.msra.mxu0 %v2330_v41  ;;  %2281 = vmatprep.mubr.msk.f32.mxu0 %vm2711_vm1, %v2712_v9 }
  0x3d   : > { %2332 = vmatprep.subr.bf16.mxu0 %v2710_v3 }
  0x44   : > { %2334 = vmatpush3.bf16.xpose.msra.mxu0 %v2333_v42  ;;  %v2954_v42 = vsub.f32 %v993_v30, %v1089_v35 }
  0x45   : > { %2335 = vmatprep.subr.bf16.mxu0 %v2710_v3 }
  0x4b   : > { %2282 = vmatmul.mubr.f32.vlgmr.msra.gmra.mrb[0].mxu0 %v432_v27  ;;  %v889_v27 = vld [vmem:[%s3431_s5 + $0x28] sm:$0xff] }
  0x4c   : > { %2337 = vmatpush3.bf16.xpose.msra.mxu0 %v2830_v12  ;;  %2292 = vmatprep.mubr.msk.f32.mxu0 %vm2711_vm1, %v2712_v9  ;;  %v948_v40 = vsel %vm346_vm0, %v889_v27, 0 }
  0x4d   : > { %2338 = vmatprep.subr.bf16.mxu0 %v2710_v3 }
  0x54   : > { %2340 = vmatpush3.bf16.xpose.msra.mxu0 %v2321_v23 }
  0x55   : > { %2341 = vmatprep.subr.bf16.mxu0 %v2710_v3 }
  0x5b   : > { %2293 = vmatmul.mubr.f32.vlgmr.msra.gmra.mrb[0].mxu0 %v433_v28  ;;  %v1038_v28 = vand.u32 4294901760, %v942_v20 }
  0x5c   : > { %2343 = vmatpush3.bf16.xpose.msra.mxu0 %v2342_v43  ;;  %2303 = vmatprep.mubr.msk.f32.mxu0 %vm2711_vm1, %v2712_v9  ;;  %v999_v43 = vsel %vm346_vm0, %v906_v31, 0 }
  0x5d   : > { %2344 = vmatprep.subr.bf16.mxu0 %v2710_v3  ;;  %v2947_v37 = vsub.f32 %v942_v20, %v1038_v28  ;;  %v1008_v20 = vsel %vm346_vm0, %v909_v18, 0 }
  0x64   : > { %2346 = vmatpush3.bf16.xpose.msra.mxu0 %v2345_v44 }
  0x65   : > { %2347 = vmatprep.subr.bf16.mxu0 %v2710_v3 }
  0x6b   : > { %2304 = vmatmul.mubr.f32.vlgmr.msra.gmra.mrb[0].mxu0 %v431_v22 }
  0x6c   : > { %2349 = vmatpush3.bf16.xpose.msra.mxu0 %v2830_v12  ;;  %2314 = vmatprep.mubr.msk.f32.mxu0 %vm2711_vm1, %v2712_v9  ;;  %v939_v9 = vsel %vm346_vm0, %v886_v4, 0 }
  0x6d   : > { %2350 = vmatprep.subr.bf16.mxu0 %v2710_v3  ;;  %v1029_v3 = vand.u32 4294901760, %v933_v61  ;;  %v1035_v21 = vand.u32 4294901760, %v939_v9 }
  0x6f   : > { %v2902_v12 = vsub.f32 %v933_v61, %v1029_v3  ;;  %v2908_v15 = vpack.c.bf16 %v1032_v5, %v1029_v3  ;;  %v2941_v33 = vsub.f32 %v939_v9, %v1035_v21  ;;  %v2952_v41 = vpack.c.bf16 %v1038_v28, %v1035_v21  ;;  %v893_v21 = vld [vmem:[%s3431_s5 + $0x48] sm:$0xff] }
  0x70   : > { %v954_v61 = vsel %vm346_vm0, %v891_v55, 0  ;;  %v960_v27 = vsel %vm346_vm0, %v893_v21, 0 }
  0x71   : > { %3463 = vst [vmem:[#allocation6_spill] sm:$0xff] %v2908_v15  ;;  %v1050_v1 = vand.u32 4294901760, %v954_v61  ;;  %v1056_v30 = vand.u32 4294901760, %v960_v27 }
  0x73   : > { %v2993_v4 = vsub.f32 %v954_v61, %v1050_v1 }
  0x74   : > { %2352 = vmatpush3.bf16.xpose.msra.mxu0 %v2321_v23  ;;  %v2419_v23 = vpack.c.bf16 %v2906_v14, %v2902_v12 }
  0x75   : > { %2354 = vmatprep.subr.bf16.mxu0 %v2904_v13 }
  0x76   : > { %2420 = vmatpush3.bf16.xpose.msra.mxu1 %v2419_v23  ;;  %v1104_v23 = vand.u32 4294901760, %v1008_v20 }
  0x77   : > { %2422 = vmatprep.subr.bf16.mxu1 %v2421_v32 }
  0x7b   : > { %2315 = vmatmul.mubr.f32.vlgmr.msra.gmra.mrb[0].mxu0 %v431_v22  ;;  %v905_v22 = vld [vmem:[%s3431_s5 + $0xa8] sm:$0xff] }
  0x7c   : > { %2356 = vmatpush3.bf16.xpose.msra.mxu0 %v2908_v15  ;;  %v996_v34 = vsel %vm346_vm0, %v905_v22, 0  ;;  %v1101_v22 = vand.u32 4294901760, %v1005_v19 }
  0x7d   : > { %2358 = vmatprep.subr.bf16.mxu0 %v2933_v29  ;;  %v1092_v38 = vand.u32 4294901760, %v996_v34 }
  0x7e   : > { %v3021_v32 = vsub.f32 %v1005_v19, %v1101_v22  ;;  %v1020_v19 = vsel %vm346_vm0, %v913_v17, 0 }
  0x7f   : > { %v2957_v44 = vsub.f32 %v996_v34, %v1092_v38  ;;  %v3023_v34 = vsub.f32 %v1008_v20, %v1104_v23  ;;  %v896_v20 = vld [vmem:[%s3431_s5 + $0x60] sm:$0xff] }
  0x84   : > { %2360 = vmatpush3.bf16.xpose.msra.mxu0 %v2952_v41 }
 0x14e   : > { %v843_v46 = vpop.f32.mrb[0].mxu0 }
 0x14f   : > { %v2545_v47 = vadd.f32 %v2008_v45, %v843_v46  ;;  %v2316_v48 = vpop.f32.mrb[1].mxu0  ;;  %v2959_v45 = vpack.c.bf16 %v1092_v38, %v1089_v35  ;;  %v1002_v46 = vsel %vm346_vm0, %v907_v36, 0  ;;  %v3029_v38 = vsub.f32 %v960_v27, %v1056_v30 }
 0x150   : > { %v1041_v48 = vand.u32 4294901760, %v945_v39 }
 0x151   : > { %v848_v49 = vmul.f32 0.70710677, %v2545_v47  ;;  %v847_v51 = vmul.f32 0.5, %v2545_v47  ;;  %3464 = vst [vmem:[#allocation7_spill] sm:$0xff] %v2959_v45  ;;  %v2423_v47 = vpack.c.bf16 %v2947_v37, %v2941_v33  ;;  %2362 = vmatprep.subr.bf16.mxu0 %v2959_v45 }
 0x152   : > { %v2974_v56 = vsub.f32 %v945_v39, %v1041_v48  ;;  %v2433_v39 = vpack.c.bf16 %v3023_v34, %v3021_v32 }
 0x153   : > { %2626 = verf.f32 %v848_v49  ;;  %v1044_v49 = vand.u32 4294901760, %v948_v40  ;;  %2424 = vmatpush3.bf16.xpose.msra.mxu1 %v2423_v47 }
 0x155   : > { %v2976_v57 = vsub.f32 %v948_v40, %v1044_v49  ;;  %v2984_v62 = vpack.c.bf16 %v1044_v49, %v1041_v48  ;;  %v894_v49 = vld [vmem:[%s3431_s5 + $0x50] sm:$0xff] }
 0x157   : > { %v2427_v63 = vpack.c.bf16 %v2976_v57, %v2974_v56  ;;  %2364 = vmatpush3.bf16.xpose.msra.mxu0 %v2984_v62 }
 0x15d   : > { %v2627_v50 = vpop.eup %2626 }
 0x15e   : > { %v850_v52 = vadd.f32 1.0, %v2627_v50  ;;  %v2425_v50 = vpack.c.bf16 %v2957_v44, %v2954_v42 }
 0x160   : > { %v2863_v53 = vmul.f32 %v850_v52, %v847_v51  ;;  %v1095_v51 = vand.u32 4294901760, %v999_v43  ;;  %v1098_v52 = vand.u32 4294901760, %v1002_v46  ;;  %2426 = vmatprep.subr.bf16.mxu1 %v2425_v50  ;;  %v895_v50 = vld [vmem:[%s3431_s5 + $0x58] sm:$0xff] }
 0x161   : > { %2428 = vmatpush3.bf16.xpose.msra.mxu1 %v2427_v63  ;;  %v966_v55 = vsel %vm346_vm0, %v895_v50, 0  ;;  %v3053_v63 = vpack.c.bf16 %v1104_v23, %v1101_v22  ;;  %v1116_v22 = vand.u32 4294901760, %v1020_v19  ;;  %v969_v23 = vsel %vm346_vm0, %v896_v20, 0  ;;  %v914_v50 = vld [vmem:[%s3431_s5 + $0xf0] sm:$0xff] }
 0x162   : > { %v852_v54 = vsel %vm346_vm0, %v2863_v53, 0.0  ;;  %v2978_v58 = vsub.f32 %v999_v43, %v1095_v51  ;;  %v2980_v59 = vsub.f32 %v1002_v46, %v1098_v52  ;;  %v3019_v31 = vpack.c.bf16 %v1098_v52, %v1095_v51  ;;  %v910_v43 = vld [vmem:[%s3431_s5 + $0xd0] sm:$0xff]  ;;  %v911_v46 = vld [vmem:[%s3431_s5 + $0xd8] sm:$0xff] }
 0x163   : > { %853 = vadd.xlane.f32.xlu0 %v852_v54  ;;  %v890_v54 = vld [vmem:[%s3431_s5 + $0x30] sm:$0xff]  ;;  %v1011_v47 = vsel %vm346_vm0, %v910_v43, 0  ;;  %v1014_v48 = vsel %vm346_vm0, %v911_v46, 0  ;;  %v1062_v61 = vand.u32 4294901760, %v966_v55  ;;  %v1065_v27 = vand.u32 4294901760, %v969_v23 }
 0x164   : > { %v951_v60 = vsel %vm346_vm0, %v890_v54, 0  ;;  %v2429_v2 = vpack.c.bf16 %v2980_v59, %v2978_v58  ;;  %2366 = vmatprep.subr.bf16.mxu0 %v3019_v31  ;;  %v1107_v51 = vand.u32 4294901760, %v1011_v47  ;;  %v1110_v52 = vand.u32 4294901760, %v1014_v48 }
 0x165   : > { %v1047_v0 = vand.u32 4294901760, %v951_v60  ;;  %v963_v54 = vsel %vm346_vm0, %v894_v49, 0  ;;  %v3095_v46 = vsub.f32 %v969_v23, %v1065_v27 }
 0x166   : > { %2430 = vmatprep.subr.bf16.mxu1 %v2429_v2 }
 0x167   : > { %v2991_v3 = vsub.f32 %v951_v60, %v1047_v0  ;;  %v3025_v35 = vpack.c.bf16 %v1050_v1, %v1047_v0  ;;  %v1059_v60 = vand.u32 4294901760, %v963_v54  ;;  %v3055_v0 = vsub.f32 %v1011_v47, %v1107_v51 }
 0x168   : > { %v3057_v1 = vsub.f32 %v1014_v48, %v1110_v52 }
 0x169   : > { %v2431_v5 = vpack.c.bf16 %v2993_v4, %v2991_v3  ;;  %2368 = vmatpush3.bf16.xpose.msra.mxu0 %v3025_v35  ;;  %v3093_v43 = vpack.c.bf16 %v1062_v61, %v1059_v60 }
 0x16a   : > { %2370 = vmatprep.subr.bf16.mxu0 %v3053_v63 }
 0x16b   : > { %2432 = vmatpush3.bf16.xpose.msra.mxu1 %v2431_v5  ;;  %v3061_v5 = vsub.f32 %v963_v54, %v1059_v60  ;;  %v899_v60 = vld [vmem:[%s3431_s5 + $0x78] sm:$0xff] }
 0x16c   : > { %2434 = vmatprep.subr.bf16.mxu1 %v2433_v39 }
 0x1f0   : > { %v854_v6 = vpop.xlane.xlu0 %853 }
 0x1f1   : > { %v856_v7 = vmul.f32 0.03125, %v854_v6  ;;  %v3063_v6 = vsub.f32 %v966_v55, %v1062_v61  ;;  %v898_v55 = vld [vmem:[%s3431_s5 + $0x70] sm:$0xff] }
 0x1f3   : > { %v2998_v8 = vsub.f32 %v2863_v53, %v856_v7  ;;  %v892_v53 = vld [vmem:[%s3431_s5 + $0x40] sm:$0xff]  ;;  %v2437_v7 = vpack.c.bf16 %v3057_v1, %v3055_v0 }
 0x1f4   : > { %v957_v26 = vsel %vm346_vm0, %v892_v53, 0  ;;  %v897_v53 = vld [vmem:[%s3431_s5 + $0x68] sm:$0xff] }
 0x1f5   : > { %v858_v9 = vmul.f32 %v2998_v8, %v2998_v8  ;;  %v1053_v28 = vand.u32 4294901760, %v957_v26 }
 0x1f7   : > { %v859_v16 = vsel %vm346_vm0, %v858_v9, 0.0  ;;  %v3027_v36 = vsub.f32 %v957_v26, %v1053_v28  ;;  %v3059_v2 = vpack.c.bf16 %v1056_v30, %v1053_v28  ;;  %v2439_v9 = vpack.c.bf16 %v3063_v6, %v3061_v5 }
 0x1f8   : > { %860 = vadd.xlane.f32.xlu0 %v859_v16  ;;  %v912_v16 = vld [vmem:[%s3431_s5 + $0xe0] sm:$0xff]  ;;  %v972_v26 = vsel %vm346_vm0, %v897_v53, 0  ;;  %v3087_v30 = vpack.c.bf16 %v1110_v52, %v1107_v51  ;;  %v915_v51 = vld [vmem:[%s3431_s5 + $0xf8] sm:$0xff]  ;;  %v1023_v52 = vsel %vm346_vm0, %v914_v50, 0  ;;  %v1258_v50 = vand.u32 4294901760, %v2900_v11 }
 0x1f9   : > { %v2435_v40 = vpack.c.bf16 %v3029_v38, %v3027_v36  ;;  %2372 = vmatpush3.bf16.xpose.msra.mxu0 %v3059_v2  ;;  %v1017_v18 = vsel %vm346_vm0, %v912_v16, 0  ;;  %v1068_v28 = vand.u32 4294901760, %v972_v26  ;;  %v1026_v54 = vsel %vm346_vm0, %v915_v51, 0 }
 0x1fa   : > { %v1113_v21 = vand.u32 4294901760, %v1017_v18  ;;  %2374 = vmatprep.subr.bf16.mxu0 %v3087_v30  ;;  %v1119_v61 = vand.u32 4294901760, %v1023_v52  ;;  %v978_v16 = vsel %vm346_vm0, %v899_v60, 0 }
 0x1fb   : > { %2436 = vmatpush3.bf16.xpose.msra.mxu1 %v2435_v40  ;;  %v3091_v40 = vsub.f32 %v1020_v19, %v1116_v22  ;;  %v3097_v47 = vsub.f32 %v972_v26, %v1068_v28  ;;  %v1074_v20 = vand.u32 4294901760, %v978_v16 }
 0x1fc   : > { %2438 = vmatprep.subr.bf16.mxu1 %v2437_v7  ;;  %v3089_v39 = vsub.f32 %v1017_v18, %v1113_v21  ;;  %v1122_v7 = vand.u32 4294901760, %v1026_v54  ;;  %v3121_v17 = vpack.c.bf16 %v1116_v22, %v1113_v21  ;;  %v3123_v18 = vpack.c.bf16 %v1068_v28, %v1065_v27 }
 0x1fd   : > { %v2443_v49 = vpack.c.bf16 %v3097_v47, %v3095_v46  ;;  %v3125_v53 = vsub.f32 %v1023_v52, %v1119_v61  ;;  %v1251_v28 = vand.u32 4294901760, %v2898_v10  ;;  %v1259_v52 = vsub.f32 %v2900_v11, %v1258_v50 }
 0x1fe   : > { %v2441_v48 = vpack.c.bf16 %v3091_v40, %v3089_v39  ;;  %3465 = vst [vmem:[#allocation8_spill] sm:$0xff] %v3121_v17  ;;  %v3127_v23 = vsub.f32 %v1026_v54, %v1122_v7  ;;  %v3129_v26 = vpack.c.bf16 %v1122_v7, %v1119_v61 }
 0x1ff   : > { %v1252_v51 = vsub.f32 %v2898_v10, %v1251_v28  ;;  %v3150_v61 = vpack.c.bf16 %v1258_v50, %v1251_v28  ;;  %v2010_v10 = vld [vmem:[%s3430_s4] ss:$0 sm:$0xff]  ;;  %v3436_v28 = vand.u32 4294901760, %v2902_v12  ;;  %v3434_v50 = vand.u32 4294901760, %v2906_v14 }
 0x200   : > { %v2445_v21 = vpack.c.bf16 %v3127_v23, %v3125_v53 }
 0x201   : > { %2376 = vmatpush3.bf16.xpose.msra.mxu0 %v3093_v43  ;;  %v1253_v54 = vand.u32 4294901760, %v1252_v51  ;;  %v3435_v51 = vand.u32 4294901760, %v2923_v24 }
 0x202   : > { %2378 = vmatprep.subr.bf16.mxu0 %v3121_v17 }
 0x203   : > { %2440 = vmatpush3.bf16.xpose.msra.mxu1 %v2439_v9  ;;  %v975_v9 = vsel %vm346_vm0, %v898_v55, 0  ;;  %v1260_v55 = vand.u32 4294901760, %v1259_v52  ;;  %v3437_v52 = vand.u32 4294901760, %v2925_v25 }
 0x204   : > { %2442 = vmatprep.subr.bf16.mxu1 %v2441_v48  ;;  %v1071_v19 = vand.u32 4294901760, %v975_v9 }
 0x205   : > { %v2385_v60 = vpack.c.bf16 %v1260_v55, %v1253_v54 }
 0x206   : > { %v3132_v48 = vsub.f32 %v975_v9, %v1071_v19  ;;  %v3143_v27 = vpack.c.bf16 %v1074_v20, %v1071_v19 }
 0x209   : > { %2380 = vmatpush3.bf16.xpose.msra.mxu0 %v3123_v18 }
 0x20a   : > { %2382 = vmatprep.subr.bf16.mxu0 %v3129_v26 }
 0x20b   : > { %2444 = vmatpush3.bf16.xpose.msra.mxu1 %v2443_v49  ;;  %v3134_v49 = vsub.f32 %v978_v16, %v1074_v20  ;;  %v2009_v20 = vld [vmem:[%s3429_s3] ss:$0 sm:$0xff] }
 0x20c   : > { %2446 = vmatprep.subr.bf16.mxu1 %v2445_v21 }
 0x20d   : > { %v2447_v22 = vpack.c.bf16 %v3134_v49, %v3132_v48 }
 0x211   : > { %2384 = vmatpush3.bf16.xpose.msra.mxu0 %v3143_v27 }
 0x212   : > { %2386 = vmatprep.subr.bf16.mxu0 %v2385_v60 }
 0x213   : > { %2448 = vmatpush3.bf16.xpose.msra.mxu1 %v2447_v22 }
 0x214   : > { %2450 = vmatprep.subr.bf16.mxu1 %v2904_v13 }
 0x285   : > { %v861_v7 = vpop.xlane.xlu0 %860 }
 0x286   : > { %v862_v9 = vmul.f32 0.03125, %v861_v7  ;;  %v1147_v7 = vsub.f32 %v2906_v14, %v3434_v50 }
 0x288   : > { %v863_v16 = vadd.f32 1e-12, %v862_v9  ;;  %v1266_v9 = vsub.f32 %v2923_v24, %v3435_v51  ;;  %v3440_v51 = vand.u32 4294901760, %v2954_v42 }
 0x28a   : > { %2628 = vrsqrt.f32 %v863_v16  ;;  %v1273_v16 = vsub.f32 %v2925_v25, %v3437_v52 }
 0x28c   : > { %v1274_v50 = vand.u32 4294901760, %v1273_v16 }
 0x294   : > { %v2629_v19 = vpop.eup %2628 }
 0x295   : > { %v865_v21 = vmul.f32 %v2629_v19, %v2998_v8  ;;  %v1140_v8 = vsub.f32 %v2902_v12, %v3436_v28  ;;  %v1280_v28 = vsub.f32 %v2954_v42, %v3440_v51  ;;  %v3444_v51 = vand.u32 4294901760, %v2978_v58 }
 0x297   : > { %v873_v11 = vmul.f32 %v2009_v20, %v865_v21  ;;  %v1141_v20 = vand.u32 4294901760, %v1140_v8 }
 0x299   : > { %v881_v22 = vadd.f32 %v2010_v10, %v873_v11  ;;  %v1148_v10 = vand.u32 4294901760, %v1147_v7  ;;  %v3441_v11 = vand.u32 4294901760, %v2941_v33 }
 0x29b   : > { %882 = vst.msk [vmem:[#allocation2] sm:$0xff] %vm346_vm0, %v881_v22  ;;  %v3439_v22 = vand.u32 4294901760, %v2947_v37  ;;  %v2387_v7 = vpack.c.bf16 %v1148_v10, %v1141_v20  ;;  %v1154_v52 = vsub.f32 %v2941_v33, %v3441_v11  ;;  %v3446_v11 = vand.u32 4294901760, %v2980_v59 }
 0x29d   : > { %v1155_v20 = vand.u32 4294901760, %v1154_v52 }
 0x2a2   : > { %v883_v54 = vld [vmem:[#allocation2] sm:$0xff] }
 0x2a3   : > { %v930_v55 = vsel %vm346_vm0, %v883_v54, 0  ;;  %v1267_v54 = vand.u32 4294901760, %v1266_v9  ;;  %v1161_v9 = vsub.f32 %v2947_v37, %v3439_v22  ;;  %v3447_v22 = vand.u32 4294901760, %v2976_v57 }
 0x2a4   : > { %v3168_v60 = vand.u32 4294901760, %v930_v55 }
 0x2a5   : > { %v2389_v16 = vpack.c.bf16 %v1274_v50, %v1267_v54  ;;  %v1162_v10 = vand.u32 4294901760, %v1161_v9  ;;  %v1281_v50 = vand.u32 4294901760, %v1280_v28  ;;  %v1294_v28 = vsub.f32 %v2978_v58, %v3444_v51 }
 0x2a6   : > { %v1126_v19 = vsub.f32 %v930_v55, %v3168_v60  ;;  %v1301_v9 = vsub.f32 %v2980_v59, %v3446_v11 }
 0x2a8   : > { %2147 = vmatprep.mubr.f32.mxu1 %v1126_v19  ;;  %v3180_v21 = vand.u32 4294901760, %v1126_v19 }
 0x2a9   : > { %2148 = vmatmul.mubr.f32.vlgmr.msra.gmra.mrb[0].mxu1 %v1126_v19 }
 0x2aa   : > { %2452 = vmatpush3.bf16.xpose.msra.mxu1 %v2908_v15  ;;  %2181 = vmatprep.mubr.f32.mxu1 %v3180_v21  ;;  %v1128_v55 = vsub.f32 %v1126_v19, %v3180_v21  ;;  %v3466_v15 = vand.u32 4294901760, %v2957_v44 }
 0x2ab   : > { %2454 = vmatprep.subr.bf16.mxu1 %v2933_v29 }
 0x2ac   : > { %v1129_v8 = vand.u32 4294901760, %v1128_v55  ;;  %v1287_v19 = vsub.f32 %v2957_v44, %v3466_v15  ;;  %v3442_v55 = vand.u32 4294901760, %v2974_v56  ;;  %v2391_v15 = vpack.c.bf16 %v1162_v10, %v1155_v20 }
 0x2ad   : > { %v3445_v20 = vand.u32 4294901760, %v2991_v3  ;;  %v3451_v10 = vand.u32 4294901760, %v2993_v4 }
 0x2ae   : > { %2079 = vmatprep.mubr.f32.mxu0 %v1129_v8  ;;  %v1288_v54 = vand.u32 4294901760, %v1287_v19  ;;  %v1168_v52 = vsub.f32 %v2974_v56, %v3442_v55  ;;  %v1295_v55 = vand.u32 4294901760, %v1294_v28 }
 0x2af   : > { %2080 = vmatmul.mubr.f32.vlgmr.msra.gmra.mrb[2].mxu0 %v1129_v8  ;;  %v1175_v8 = vsub.f32 %v2976_v57, %v3447_v22 }
 0x2b0   : > { %2388 = vmatpush3.bf16.xpose.msra.mxu0 %v2387_v7  ;;  %2113 = vmatprep.mubr.f32.mxu0 %v3168_v60  ;;  %v2393_v7 = vpack.c.bf16 %v1288_v54, %v1281_v50  ;;  %v3448_v50 = vand.u32 4294901760, %v3021_v32  ;;  %v3450_v54 = vand.u32 4294901760, %v3023_v34 }
 0x2b1   : > { %2390 = vmatprep.subr.bf16.mxu0 %v2389_v16  ;;  %v1169_v16 = vand.u32 4294901760, %v1168_v52  ;;  %v1176_v19 = vand.u32 4294901760, %v1175_v8  ;;  %v1189_v52 = vsub.f32 %v2993_v4, %v3451_v10 }
 0x2b2   : > { %2456 = vmatpush3.bf16.xpose.msra.mxu1 %v2952_v41  ;;  %v1315_v28 = vsub.f32 %v3023_v34, %v3450_v54 }
 0x2b3   : > { %2458 = vmatprep.subr.bf16.mxu1 %v2959_v45  ;;  %v1302_v45 = vand.u32 4294901760, %v1301_v9  ;;  %v2395_v51 = vpack.c.bf16 %v1176_v19, %v1169_v16  ;;  %v1190_v16 = vand.u32 4294901760, %v1189_v52  ;;  %v3449_v19 = vand.u32 4294901760, %v3027_v36 }
 0x2b4   : > { %v1316_v22 = vand.u32 4294901760, %v1315_v28 }
 0x2b5   : > { %v2397_v8 = vpack.c.bf16 %v1302_v45, %v1295_v55  ;;  %v3452_v45 = vand.u32 4294901760, %v3055_v0  ;;  %v3454_v55 = vand.u32 4294901760, %v3057_v1 }
 0x2b8   : > { %2392 = vmatpush3.bf16.xpose.msra.mxu0 %v2391_v15  ;;  %v1182_v15 = vsub.f32 %v2991_v3, %v3445_v20  ;;  %v3455_v20 = vand.u32 4294901760, %v3029_v38 }
 0x2b9   : > { %2394 = vmatprep.subr.bf16.mxu0 %v2393_v7  ;;  %v1308_v7 = vsub.f32 %v3021_v32, %v3448_v50 }
 0x2ba   : > { %2460 = vmatpush3.bf16.xpose.msra.mxu1 %v2984_v62  ;;  %v1183_v9 = vand.u32 4294901760, %v1182_v15  ;;  %v1203_v15 = vsub.f32 %v3029_v38, %v3455_v20 }
 0x2bb   : > { %2462 = vmatprep.subr.bf16.mxu1 %v3019_v31  ;;  %v1309_v11 = vand.u32 4294901760, %v1308_v7  ;;  %v1329_v7 = vsub.f32 %v3057_v1, %v3454_v55 }
 0x2bc   : > { %v2399_v50 = vpack.c.bf16 %v1190_v16, %v1183_v9  ;;  %v1204_v9 = vand.u32 4294901760, %v1203_v15  ;;  %v3453_v16 = vand.u32 4294901760, %v3061_v5 }
 0x2bd   : > { %v2401_v52 = vpack.c.bf16 %v1316_v22, %v1309_v11  ;;  %v1330_v10 = vand.u32 4294901760, %v1329_v7  ;;  %v3456_v11 = vand.u32 4294901760, %v3089_v39  ;;  %v3457_v22 = vand.u32 4294901760, %v3091_v40 }
 0x2c0   : > { %2396 = vmatpush3.bf16.xpose.msra.mxu0 %v2395_v51  ;;  %v1196_v51 = vsub.f32 %v3027_v36, %v3449_v19  ;;  %v3458_v19 = vand.u32 4294901760, %v3063_v6 }
 0x2c1   : > { %2398 = vmatprep.subr.bf16.mxu0 %v2397_v8  ;;  %v1322_v8 = vsub.f32 %v3055_v0, %v3452_v45 }
 0x2c2   : > { %2464 = vmatpush3.bf16.xpose.msra.mxu1 %v3025_v35  ;;  %v1197_v28 = vand.u32 4294901760, %v1196_v51  ;;  %v1217_v51 = vsub.f32 %v3063_v6, %v3458_v19  ;;  %v1237_v19 = vand.u32 4294901760, %v3132_v48 }
 0x2c3   : > { %2466 = vmatprep.subr.bf16.mxu1 %v3053_v63  ;;  %v1323_v54 = vand.u32 4294901760, %v1322_v8  ;;  %v1343_v8 = vsub.f32 %v3091_v40, %v3457_v22 }
 0x2c4   : > { %v2403_v45 = vpack.c.bf16 %v1204_v9, %v1197_v28  ;;  %v1218_v28 = vand.u32 4294901760, %v1217_v51  ;;  %v1223_v9 = vand.u32 4294901760, %v3095_v46 }
 0x2c5   : > { %v2405_v15 = vpack.c.bf16 %v1330_v10, %v1323_v54  ;;  %v1344_v20 = vand.u32 4294901760, %v1343_v8  ;;  %v1349_v10 = vand.u32 4294901760, %v3125_v53  ;;  %v1356_v54 = vand.u32 4294901760, %v3127_v23 }
 0x2c8   : > { %2400 = vmatpush3.bf16.xpose.msra.mxu0 %v2399_v50  ;;  %v1210_v50 = vsub.f32 %v3061_v5, %v3453_v16  ;;  %v3460_v16 = vand.u32 4294901760, %v3097_v47 }
 0x2c9   : > { %2402 = vmatprep.subr.bf16.mxu0 %v2401_v52  ;;  %v1336_v52 = vsub.f32 %v3089_v39, %v3456_v11 }
 0x2ca   : > { %2468 = vmatpush3.bf16.xpose.msra.mxu1 %v3059_v2  ;;  %v1211_v7 = vand.u32 4294901760, %v1210_v50  ;;  %v1231_v50 = vsub.f32 %v3097_v47, %v3460_v16 }
 0x2cb   : > { %2470 = vmatprep.subr.bf16.mxu1 %v3087_v30  ;;  %v1337_v55 = vand.u32 4294901760, %v1336_v52  ;;  %v1357_v52 = vsub.f32 %v3127_v23, %v1356_v54 }
 0x2cc   : > { %v2407_v11 = vpack.c.bf16 %v1218_v28, %v1211_v7  ;;  %v1232_v22 = vand.u32 4294901760, %v1231_v50  ;;  %v1244_v7 = vand.u32 4294901760, %v3134_v49  ;;  %v3467_v50 = vand.u32 4294901760, %v2902_v12 }
 0x2cd   : > { %v2409_v51 = vpack.c.bf16 %v1344_v20, %v1337_v55  ;;  %v1238_v20 = vsub.f32 %v3132_v48, %v1237_v19  ;;  %v3470_v48 = vand.u32 4294901760, %v2925_v25 }
 0x2cf   : > { %v1239_v55 = vand.u32 4294901760, %v1238_v20  ;;  %v3481_v20 = vand.u32 4294901760, %v3021_v32  ;;  %v3488_v32 = vand.u32 4294901760, %v3063_v6  ;;  %v3493_v6 = vld [vmem:[#allocation7_spill] sm:$0xff] }
 0x2d0   : > { %2404 = vmatpush3.bf16.xpose.msra.mxu0 %v2403_v45  ;;  %v1224_v45 = vsub.f32 %v3095_v46, %v1223_v9 }
 0x2d1   : > { %2406 = vmatprep.subr.bf16.mxu0 %v2405_v15  ;;  %v1350_v15 = vsub.f32 %v3125_v53, %v1349_v10  ;;  %v1245_v53 = vsub.f32 %v3134_v49, %v1244_v7 }
 0x2d2   : > { %2472 = vmatpush3.bf16.xpose.msra.mxu1 %v3093_v43  ;;  %v1225_v8 = vand.u32 4294901760, %v1224_v45 }
 0x2d3   : > { %2474 = vmatprep.subr.bf16.mxu1 %v3121_v17  ;;  %v1351_v28 = vand.u32 4294901760, %v1350_v15  ;;  %v1358_v17 = vand.u32 4294901760, %v1357_v52 }
 0x2d4   : > { %v2411_v16 = vpack.c.bf16 %v1232_v22, %v1225_v8  ;;  %v3469_v22 = vand.u32 4294901760, %v2923_v24  ;;  %v3474_v24 = vand.u32 4294901760, %v2957_v44  ;;  %v3477_v8 = vand.u32 4294901760, %v2978_v58 }
 0x2d5   : > { %v2413_v23 = vpack.c.bf16 %v1358_v17, %v1351_v28  ;;  %v3471_v17 = vand.u32 4294901760, %v2941_v33  ;;  %v3478_v33 = vand.u32 4294901760, %v2980_v59  ;;  %v3479_v28 = vand.u32 4294901760, %v2991_v3 }
 0x2d6   : > { %v2485_v49 = vpack.c.bf16 %v3470_v48, %v3469_v22  ;;  %v3484_v58 = vand.u32 4294901760, %v3029_v38  ;;  %v3491_v38 = vand.u32 4294901760, %v3097_v47 }
 0x2d8   : > { %2408 = vmatpush3.bf16.xpose.msra.mxu0 %v2407_v11  ;;  %v1246_v11 = vand.u32 4294901760, %v1245_v53  ;;  %v3482_v53 = vand.u32 4294901760, %v3023_v34 }
 0x2d9   : > { %2410 = vmatprep.subr.bf16.mxu0 %v2409_v51  ;;  %v3468_v51 = vand.u32 4294901760, %v2906_v14  ;;  %v3473_v14 = vand.u32 4294901760, %v2954_v42  ;;  %v3480_v42 = vand.u32 4294901760, %v2993_v4  ;;  %v3487_v4 = vand.u32 4294901760, %v3061_v5  ;;  %v3492_v5 = vld [vmem:[#allocation6_spill] sm:$0xff] }
 0x2da   : > { %2476 = vmatpush3.bf16.xpose.msra.mxu1 %v3123_v18  ;;  %v2415_v45 = vpack.c.bf16 %v1246_v11, %v1239_v55  ;;  %v3486_v55 = vand.u32 4294901760, %v3057_v1  ;;  %v3489_v11 = vand.u32 4294901760, %v3089_v39  ;;  %v2509_v1 = vpack.c.bf16 %v1356_v54, %v1349_v10 }
 0x2db   : > { %2478 = vmatprep.subr.bf16.mxu1 %v3129_v26  ;;  %v2483_v15 = vpack.c.bf16 %v3468_v51, %v3467_v50  ;;  %v2489_v25 = vpack.c.bf16 %v3474_v24, %v3473_v14  ;;  %v2495_v44 = vpack.c.bf16 %v3480_v42, %v3479_v28  ;;  %v2503_v34 = vpack.c.bf16 %v3488_v32, %v3487_v4 }
 0x2dc   : > { %v2511_v50 = vpack.c.bf16 %v1244_v7, %v1237_v19 }
 0x2e0   : > { %2412 = vmatpush3.bf16.xpose.msra.mxu0 %v2411_v16  ;;  %v3476_v16 = vand.u32 4294901760, %v2976_v57  ;;  %v3483_v57 = vand.u32 4294901760, %v3027_v36 }
 0x2e1   : > { %2414 = vmatprep.subr.bf16.mxu0 %v2413_v23  ;;  %v3485_v23 = vand.u32 4294901760, %v3055_v0  ;;  %v2507_v0 = vpack.c.bf16 %v3491_v38, %v1223_v9 }
 0x2e2   : > { %2480 = vmatpush3.bf16.xpose.msra.mxu1 %v3143_v27  ;;  %v2499_v59 = vpack.c.bf16 %v3484_v58, %v3483_v57 }
 0x2e3   : > { %2482 = vmatprep.subr.bf16.mxu1 %v3150_v61  ;;  %v3472_v61 = vand.u32 4294901760, %v2947_v37  ;;  %v2493_v37 = vpack.c.bf16 %v3478_v33, %v3477_v8  ;;  %v2501_v3 = vpack.c.bf16 %v3486_v55, %v3485_v23 }
 0x2e5   : > { %v2487_v12 = vpack.c.bf16 %v3472_v61, %v3471_v17 }
 0x2e8   : > { %2416 = vmatpush3.bf16.xpose.msra.mxu0 %v2415_v45  ;;  %v3490_v45 = vand.u32 4294901760, %v3091_v40 }
 0x2e9   : > { %2182 = vmatmul.mubr.f32.vlgmr.msra.gmra.mrb[0].mxu1 %v3180_v21  ;;  %v3475_v21 = vand.u32 4294901760, %v2974_v56  ;;  %v2497_v56 = vpack.c.bf16 %v3482_v53, %v3481_v20 }
 0x2ea   : > { %2484 = vmatpush3.bf16.xpose.msra.mxu1 %v2483_v15  ;;  %2215 = vmatprep.mubr.f32.mxu1 %v3168_v60  ;;  %v2505_v36 = vpack.c.bf16 %v3490_v45, %v3489_v11 }
 0x2eb   : > { %2486 = vmatprep.subr.bf16.mxu1 %v2485_v49  ;;  %v2491_v52 = vpack.c.bf16 %v3476_v16, %v3475_v21 }
 0x2ef   : > { %2114 = vmatmul.mubr.f32.vlgmr.msra.gmra.mrb[2].mxu0 %v3168_v60 }
 0x2f2   : > { %2488 = vmatpush3.bf16.xpose.msra.mxu1 %v2487_v12 }
 0x2f3   : > { %2490 = vmatprep.subr.bf16.mxu1 %v2489_v25 }
 0x2fa   : > { %2492 = vmatpush3.bf16.xpose.msra.mxu1 %v2491_v52 }
 0x2fb   : > { %2494 = vmatprep.subr.bf16.mxu1 %v2493_v37 }
 0x302   : > { %2496 = vmatpush3.bf16.xpose.msra.mxu1 %v2495_v44 }
 0x303   : > { %2498 = vmatprep.subr.bf16.mxu1 %v2497_v56 }
 0x30a   : > { %2500 = vmatpush3.bf16.xpose.msra.mxu1 %v2499_v59 }
 0x30b   : > { %2502 = vmatprep.subr.bf16.mxu1 %v2501_v3 }
 0x312   : > { %2504 = vmatpush3.bf16.xpose.msra.mxu1 %v2503_v34 }
 0x313   : > { %2506 = vmatprep.subr.bf16.mxu1 %v2505_v36 }
 0x31a   : > { %2508 = vmatpush3.bf16.xpose.msra.mxu1 %v2507_v0 }
 0x31b   : > { %2510 = vmatprep.subr.bf16.mxu1 %v2509_v1 }
 0x322   : > { %2512 = vmatpush3.bf16.xpose.msra.mxu1 %v2511_v50 }
 0x323   : > { %2514 = vmatprep.subr.bf16.mxu1 %v2904_v13  ;;  %v3494_v13 = vld [vmem:[#allocation8_spill] sm:$0xff] }
 0x329   : > { %2216 = vmatmul.mubr.f32.vlgmr.msra.gmra.mrb[0].mxu1 %v3168_v60 }
 0x32a   : > { %2516 = vmatpush3.bf16.xpose.msra.mxu1 %v3492_v5  ;;  %2249 = vmatprep.mubr.f32.mxu1 %v3168_v60 }
 0x32b   : > { %2518 = vmatprep.subr.bf16.mxu1 %v2933_v29 }
 0x332   : > { %2520 = vmatpush3.bf16.xpose.msra.mxu1 %v2952_v41 }
 0x333   : > { %2522 = vmatprep.subr.bf16.mxu1 %v3493_v6 }
 0x33a   : > { %2524 = vmatpush3.bf16.xpose.msra.mxu1 %v2984_v62  ;;  %v918_v62 = vlaneseq }
 0x33b   : > { %2526 = vmatprep.subr.bf16.mxu1 %v3019_v31 }
 0x33c   : > { %v919_v31 = vshrl.u32 %v918_v62, 7 }
 0x342   : > { %2528 = vmatpush3.bf16.xpose.msra.mxu1 %v3025_v35  ;;  %v920_v35 = vsub.s32 0, %v919_v31 }
 0x343   : > { %2530 = vmatprep.subr.bf16.mxu1 %v3053_v63  ;;  %v916_v63 = vld [vmem:[%s3432_s6] sm:$0x3] }
 0x34a   : > { %2532 = vmatpush3.bf16.xpose.msra.mxu1 %v3059_v2  ;;  %v924_v2 = vsub.s32 1, %v919_v31 }
 0x34b   : > { %2534 = vmatprep.subr.bf16.mxu1 %v3087_v30  ;;  %v921_v30 = vrot.slane %v916_v63, %v920_v35 }
 0x34c   : > { %v925_v39 = vrot.slane %v916_v63, %v924_v2 }
 0x352   : > { %2536 = vmatpush3.bf16.xpose.msra.mxu1 %v3093_v43 }
 0x353   : > { %2538 = vmatprep.subr.bf16.mxu1 %v3494_v13 }
 0x35a   : > { %2540 = vmatpush3.bf16.xpose.msra.mxu1 %v3123_v18 }
 0x35b   : > { %2542 = vmatprep.subr.bf16.mxu1 %v3129_v26 }
 0x362   : > { %2544 = vmatpush3.bf16.xpose.msra.mxu1 %v3143_v27 }
 0x369   : > { %2250 = vmatmul.mubr.f32.vlgmr.msra.gmra.mrb[0].mxu1 %v3168_v60 }
 0x3c2   : > { %v1363_v29 = vpop.f32.mrb[2].mxu0 }
 0x3c3   : > { %v1365_v41 = vpop.f32.mrb[3].mxu0  ;;  %v2546_v40 = vadd.f32 %v1363_v29, %v921_v30 }
 0x3c4   : > { %v2548_v43 = vadd.f32 %v1365_v41, %v925_v39 }
 0x43c   : > { %v1878_v46 = vpop.f32.mrb[0].mxu1 }
 0x43d   : > { %v2547_v47 = vadd.f32 %v2546_v40, %v1878_v46  ;;  %v1880_v18 = vpop.f32.mrb[1].mxu1 }
 0x43e   : > { %v2549_v26 = vadd.f32 %v2548_v43, %v1880_v18 }
 0x43f   : > { %1883 = vst [vmem:[%s313_s8] sm:$0xff] %v2547_v47 }
 0x440   : > { %1884 = vst [vmem:[%s313_s8 + $0x8] sm:$0xff] %v2549_v26 }
 0x441   : > { %2643 = shalt.err (!%p2640_p5)
}
 0x442   : > { %s2644_s20 = scalar_lea.hbm %s3379_s16, 256  ;;  %s2648_s30 = scalar_lea.hbm %s3433_s7, 512 }
 0x443   : > { %p2645_p6 = scmp.ne.s32.totalorder %s3379_s16, %s2644_s20  ;;  %p2649_p10 = scmp.lt.u32.totalorder %s3379_s16, %s3433_s7 }
 0x444   : > { %p2650_p11 = scmp.lt.u32.totalorder %s2648_s30, %s2644_s20  ;;  %p2652_p13 = scmp.lt.u32.totalorder %s2644_s20, %s3379_s16 }
 0x445   : > { %p2646_p7 = pnand %p2645_p6, %p2794_p4 }
 0x446   : > { %p2651_p12 = por %p2650_p11, %p2649_p10 }
 0x447   : > { %p2647_p9 = pneg %p2646_p7 }
 0x448   : > { %p2653_p0 = por %p2652_p13, %p2651_p12 }
 0x44a   : > { %p2654_p1 = pnand %p2653_p0, %p2647_p9 }
 0x44c   : > { %2657 = shalt.err (!%p2654_p1)
}
 0x44d   : > { %2568 = dma.vmem_to_hbm [thread:$0]  (%p2794_p4), %s3381_s10, 256, %s3379_s16, %s1886_s27  }
 0x44e PF: > { %p2574_p2 = scmp.ge.s32.totalorder %s2708_s29, 2  ;;  %s1914_s15 = sand.u32 1, %s2688_s24  }
 0x44f   : > { %s1915_s17 = scalar_lea.sflag [#allocation4], %s1914_s15 }
 0x450   : > { %p2571_p3 = pnand %p2574_p2, %p2801_p8 }
 0x452   : > { %2683 = dma.done.wait (!%p2571_p3), %s1915_s17, 256  }
 0x453   : > { %2685 = vsyncadd (!%p2571_p3), %s1915_s17, 4294967040  ;;  %s20_s29 = sadd.s32 1, %s2708_s29   ;;  %s3495_s24 = smov %s2692_s25 }
 0x454   : > { %p17_p5 = scmp.ge.s32.totalorder %s20_s29, 4   ;;  %s3496_s25 = smov %s2696_s26 }
 0x455   : > { %s3497_s26 = smov %s2807_s14  ;;  %s3498_s27 = smov %s2704_s28 }
 0x456   : > { %s3499_s28 = smov %s3501_s9  ;;  %19 = sbr.rel (!%p17_p5) target bundleno = 4 (0x4), region = 93 }
 0x45d   :  { %1920 = vsyncpa [#allocation4], 1 }
 0x45e   :  { %1922 = vsyncpa [#allocation4 + $0x1], 1 }

</bundles_post_ra>
